<compile_context>
chip_gen: v7x
topology: tpu7x:2x2x1
jax: 0.10.0
libtpu: 0.0.40
codegen_flags: <defaults>
</compile_context>

<pallas_src>
import functools

import jax
import jax.numpy as jnp
from jax.experimental import pallas as pl
from jax.experimental.pallas import tpu as pltpu


# ------------------------------ in-kernel helpers ------------------------------ #

def _gemm(lhs_bf16, w_ref, b_ref):
    """(B, R, K) bf16 @ (K, N) bf16 -> (B, R, N) f32 with bias row added."""
    b, r, k = lhs_bf16.shape
    out = jnp.dot(lhs_bf16.reshape(b * r, k), w_ref[...],
                  preferred_element_type=jnp.float32)
    out = out + b_ref[...]                      # (1, N) broadcast
    return out.reshape(b, r, w_ref.shape[1])


def _vpad(a, pad):
    """Zero-pad rows (vertical image padding) of a (B, H, W*C) value."""
    if pad == 0:
        return a
    b, _, c = a.shape
    z = jnp.zeros((b, pad, c), a.dtype)
    return jnp.concatenate([z, a, z], axis=1)


def _conv_s1(act_f32, w_ref, b_ref, *, kh, pad):
    """Stride-1 conv: vertical taps folded along K -> a single MXU matmul.

    act_f32 : (B, H, W*Cin) f32.   w_ref : (kh*W*Cin, Wo*Cout) bf16.
    """
    ho = act_f32.shape[1] + 2 * pad - kh + 1
    x = _vpad(act_f32.astype(jnp.bfloat16), pad)          # cast ONCE per layer
    taps = [x[:, i:i + ho, :] for i in range(kh)]         # contiguous row windows
    lhs = taps[0] if kh == 1 else jnp.concatenate(taps, axis=-1)
    return _gemm(lhs, w_ref, b_ref)


# ----------------------------------- kernel ------------------------------------ #

def _encoder_kernel(stride_mode, n_res, *refs):
    o_ref = refs[-1]

    if stride_mode == 4:
        # refs: f2a, f2b (stride-phase folded padded input), then params, then out.
        f2a_ref, f2b_ref = refs[0], refs[1]
        prefs = refs[2:-1]
        w1, b1, w2, b2, w3, b3 = prefs[0:6]
        pidx = 6

        # ---- conv1: 4x4 stride-2 pad-1, as two output-row-parity streams ----
        oe = jnp.maximum(_gemm(f2a_ref[...], w1, b1), 0.0)   # even output rows
        oo = jnp.maximum(_gemm(f2b_ref[...], w1, b1), 0.0)   # odd output rows
        oe = oe.astype(jnp.bfloat16)
        oo = oo.astype(jnp.bfloat16)
        bsz, hh, n1 = oe.shape                                # hh == ho1//2 == ho2
        zrow = jnp.zeros((bsz, 1, n1), jnp.bfloat16)
        qe = jnp.concatenate([zrow, oo], axis=1)              # padded rows q even
        qo = jnp.concatenate([oe, zrow], axis=1)              # padded rows q odd

        # ---- conv2: 4x4 stride-2 pad-1 (taps = contiguous slices of qe/qo) ----
        lhs2 = jnp.concatenate(
            [qe[:, 0:hh, :], qo[:, 0:hh, :],
             qe[:, 1:hh + 1, :], qo[:, 1:hh + 1, :]], axis=-1)
        act = jnp.maximum(_gemm(lhs2, w2, b2), 0.0)

        # ---- conv3: 3x3 stride-1 pad-1 (no ReLU) ----
        act = _conv_s1(act, w3, b3, kh=3, pad=1)
    else:
        # stride_mode == 2: refs: f1 (pair-folded padded input), params, out.
        f1_ref = refs[0]
        prefs = refs[1:-1]
        w1, b1, w2, b2 = prefs[0:4]
        pidx = 4
        f1 = f1_ref[...]
        hh = f1.shape[1] - 1                                  # ho1
        lhs1 = jnp.concatenate([f1[:, 0:hh, :], f1[:, 1:hh + 1, :]], axis=-1)
        act = jnp.maximum(_gemm(lhs1, w1, b1), 0.0)
        act = _conv_s1(act, w2, b2, kh=3, pad=1)              # 3x3 s1 p1, no ReLU

    # ---- ResBlocks ----
    for _ in range(n_res):
        rw1, rb1, rw2, rb2 = prefs[pidx:pidx + 4]
        pidx += 4
        t = jnp.maximum(act, 0.0)                             # pre-ReLU (once)
        m = jnp.maximum(_conv_s1(t, rw1, rb1, kh=3, pad=1), 0.0)
        r = _conv_s1(m, rw2, rb2, kh=1, pad=0)
        act = act + r                                         # residual add (f32)

    # ---- trailing encoder ReLU ----
    o_ref[...] = jnp.maximum(act, 0.0).astype(o_ref.dtype)


# --------------------------- wrapper-side weight prep --------------------------- #

def _expand_conv(w, b, w_in, stride, pad):
    """Fold horizontal taps / stride / padding into a per-layer GEMM weight and
    stack the kh vertical taps along K.

    w : (kh, kw, cin, cout), b : (cout,)
    Returns (kh*w_in*cin, w_out*cout), (1, w_out*cout), w_out with
      W[i*w_in*cin + wi*cin + c, ow*cout + d] = w[i, wi - ow*stride + pad, c, d]
    (zero where the horizontal tap reads padding).
    """
    kh, kw, cin, cout = w.shape
    w_out = (w_in + 2 * pad - kw) // stride + 1
    wi = jnp.arange(w_in)[:, None]
    ow = jnp.arange(w_out)[None, :]
    j = wi - ow * stride + pad                       # (w_in, w_out)
    valid = (j >= 0) & (j < kw)
    jc = jnp.clip(j, 0, kw - 1)
    wm = w[:, jc]                                    # (kh, w_in, w_out, cin, cout)
    wm = jnp.where(valid[None, :, :, None, None], wm, 0.0)
    wm = jnp.transpose(wm, (0, 1, 3, 2, 4))          # (kh, w_in, cin, w_out, cout)
    wm = wm.reshape(kh * w_in * cin, w_out * cout)   # K-stacked over vertical taps
    b_row = jnp.tile(b, w_out).reshape(1, w_out * cout)
    return wm, b_row, w_out


# -------------------------------- parameter setup ------------------------------- #

def _init_conv(key, cin, cout, kh, kw):
    kw_key, kb_key = jax.random.split(key)
    fan_in = cin * kh * kw
    bound = 1.0 / jnp.sqrt(fan_in)
    w = jax.random.uniform(kw_key, (kh, kw, cin, cout), jnp.float32, -bound, bound)
    b = jax.random.uniform(kb_key, (cout,), jnp.float32, -bound, bound)
    return w, b


def init_encoder(key, in_channel, channel, n_res_block, n_res_channel, stride):
    params = {"front": [], "res": [], "stride": stride}
    if stride == 4:
        front_cfg = [
            (in_channel, channel // 2, 4, 2, 1, True),
            (channel // 2, channel, 4, 2, 1, True),
            (channel, channel, 3, 1, 1, False),
        ]
    elif stride == 2:
        front_cfg = [
            (in_channel, channel // 2, 4, 2, 1, True),
            (channel // 2, channel, 3, 1, 1, False),
        ]
    else:
        raise ValueError("stride must be 2 or 4")

    keys = jax.random.split(key, len(front_cfg) + 2 * n_res_block)
    ki = 0
    for (cin, cout, ks, st, pd, relu) in front_cfg:
        w, b = _init_conv(keys[ki], cin, cout, ks, ks); ki += 1
        params["front"].append(dict(w=w, b=b, stride=st, pad=pd, relu=relu))
    for _ in range(n_res_block):
        w1, b1 = _init_conv(keys[ki], channel, n_res_channel, 3, 3); ki += 1
        w2, b2 = _init_conv(keys[ki], n_res_channel, channel, 1, 1); ki += 1
        params["res"].append(dict(w1=w1, b1=b1, w2=w2, b2=b2))
    return params


# --------------------------------- forward pass --------------------------------- #

def encoder_forward(params, x_nchw, *, batch_block=None):
    n, cin, h, w = x_nchw.shape
    stride_mode = params["stride"]

    # Pad channels so the input K dim is lane-dense (3 -> 8).
    cin_p = max(8, -(-cin // 8) * 8)
    xt = jnp.transpose(x_nchw, (0, 2, 3, 1))                      # NHWC
    if cin_p != cin:
        xt = jnp.pad(xt, ((0, 0), (0, 0), (0, 0), (0, cin_p - cin)))
    x2d = xt.reshape(n, h, w * cin_p).astype(jnp.bfloat16)        # (N, H, W*Cp)

    # Images per grid step; keep grid length >= 2 when possible (v7x megacore).
    if batch_block is None:
        batch_block = min(8, max(1, n // 2)) if n > 1 else 1
    bb = batch_block
    n_pad = -(-n // bb) * bb
    if n_pad != n:
        x2d = jnp.pad(x2d, ((0, n_pad - n), (0, 0), (0, 0)))

    cols0 = w * cin_p
    front = params["front"]
    operands = []
    flops = 0

    if stride_mode == 4:
        l1, l2, l3 = front
        assert l1["w"].shape[0] == 4 and l1["stride"] == 2 and l1["pad"] == 1
        assert l2["w"].shape[0] == 4 and l2["stride"] == 2 and l2["pad"] == 1
        assert h % 4 == 0, "stride-4 path requires H % 4 == 0"
        ho1 = h // 2
        # Vertically padded input, pre-folded into the two stride-4 row phases
        # (each row of f2a/f2b carries the 4 vertical taps of one conv1 output row).
        xp = jnp.pad(x2d, ((0, 0), (1, 1), (0, 0)))               # (N, H+2, cols0)
        f2a = xp[:, 0:2 * ho1, :].reshape(n_pad, ho1 // 2, 4 * cols0)
        f2b = xp[:, 2:2 * ho1 + 2, :].reshape(n_pad, ho1 // 2, 4 * cols0)
        act_inputs = [f2a, f2b]

        w1 = l1["w"]
        if cin_p != cin:
            w1 = jnp.pad(w1, ((0, 0), (0, 0), (0, cin_p - cin), (0, 0)))
        wm1, br1, w_1 = _expand_conv(w1, l1["b"], w, 2, 1)
        wm2, br2, w_2 = _expand_conv(l2["w"], l2["b"], w_1, 2, 1)
        wm3, br3, w_3 = _expand_conv(l3["w"], l3["b"], w_2, 1, 1)
        ho2 = ho1 // 2
        operands += [wm1.astype(jnp.bfloat16), br1.astype(jnp.float32),
                     wm2.astype(jnp.bfloat16), br2.astype(jnp.float32),
                     wm3.astype(jnp.bfloat16), br3.astype(jnp.float32)]
        flops += 2 * ho1 * wm1.shape[0] * wm1.shape[1]
        flops += 2 * ho2 * wm2.shape[0] * wm2.shape[1]
        flops += 2 * ho2 * wm3.shape[0] * wm3.shape[1]
        cur_h, cur_w = ho2, w_3
        out_c = int(l3["w"].shape[-1])
    else:
        l1, l2 = front
        assert l1["w"].shape[0] == 4 and l1["stride"] == 2 and l1["pad"] == 1
        assert h % 2 == 0, "stride-2 path requires H % 2 == 0"
        ho1 = h // 2
        # Pair-folded padded input: each row carries two vertical taps.
        xp = jnp.pad(x2d, ((0, 0), (1, 1), (0, 0)))               # (N, H+2, cols0)
        f1 = xp.reshape(n_pad, (h + 2) // 2, 2 * cols0)
        act_inputs = [f1]

        w1 = l1["w"]
        if cin_p != cin:
            w1 = jnp.pad(w1, ((0, 0), (0, 0), (0, cin_p - cin), (0, 0)))
        wm1, br1, w_1 = _expand_conv(w1, l1["b"], w, 2, 1)
        wm2, br2, w_2 = _expand_conv(l2["w"], l2["b"], w_1, 1, 1)
        operands += [wm1.astype(jnp.bfloat16), br1.astype(jnp.float32),
                     wm2.astype(jnp.bfloat16), br2.astype(jnp.float32)]
        flops += 2 * ho1 * wm1.shape[0] * wm1.shape[1]
        flops += 2 * ho1 * wm2.shape[0] * wm2.shape[1]
        cur_h, cur_w = ho1, w_2
        out_c = int(l2["w"].shape[-1])

    for rb in params["res"]:
        wr1, brr1, _ = _expand_conv(rb["w1"], rb["b1"], cur_w, 1, 1)
        wr2, brr2, _ = _expand_conv(rb["w2"], rb["b2"], cur_w, 1, 0)
        operands += [wr1.astype(jnp.bfloat16), brr1.astype(jnp.float32),
                     wr2.astype(jnp.bfloat16), brr2.astype(jnp.float32)]
        flops += 2 * cur_h * wr1.shape[0] * wr1.shape[1]
        flops += 2 * cur_h * wr2.shape[0] * wr2.shape[1]
    n_res = len(params["res"])

    out_cols = cur_w * out_c
    out_shape = jax.ShapeDtypeStruct((n_pad, cur_h, out_cols), jnp.float32)

    in_specs = []
    for a in act_inputs:
        in_specs.append(pl.BlockSpec((bb,) + tuple(a.shape[1:]),
                                     lambda b: (b, 0, 0)))
    for op in operands:                 # all params are 2-D, constant index map
        in_specs.append(pl.BlockSpec(op.shape, lambda b: (0, 0)))
    out_specs = pl.BlockSpec((bb, cur_h, out_cols), lambda b: (b, 0, 0))

    bytes_accessed = sum(int(a.size) * a.dtype.itemsize for a in act_inputs)
    bytes_accessed += sum(int(op.size) * op.dtype.itemsize for op in operands)
    bytes_accessed += int(n_pad) * cur_h * out_cols * 4

    kern = functools.partial(_encoder_kernel, stride_mode, n_res)

    out = pl.pallas_call(
        kern,
        out_shape=out_shape,
        grid=(n_pad // bb,),
        in_specs=in_specs,
        out_specs=out_specs,
        compiler_params=pltpu.CompilerParams(
            dimension_semantics=("parallel",),
            vmem_limit_bytes=32 * 1024 * 1024),
        cost_estimate=pl.CostEstimate(flops=int(flops) * int(n_pad),
                                      transcendentals=0,
                                      bytes_accessed=int(bytes_accessed)),
    )(*act_inputs, *operands)

    out = out[:n].reshape(n, cur_h, cur_w, out_c)
    return jnp.transpose(out, (0, 3, 1, 2))            # back to NCHW


# ------------------------------ pure-JAX reference ------------------------------ #

def _ref_encoder(params, x):
    def conv(a, wgt, bias, stride, pad):
        y = jax.lax.conv_general_dilated(
            a, wgt, (stride, stride), [(pad, pad), (pad, pad)],
            dimension_numbers=("NCHW", "HWIO", "NCHW"))
        return y + bias[None, :, None, None]

    act = x
    for layer in params["front"]:
        act = conv(act, layer["w"], layer["b"], layer["stride"], layer["pad"])
        if layer["relu"]:
            act = jnp.maximum(act, 0.0)
    for rb in params["res"]:
        t = jnp.maximum(act, 0.0)
        m = jnp.maximum(conv(t, rb["w1"], rb["b1"], 1, 1), 0.0)
        r = conv(m, rb["w2"], rb["b2"], 1, 0)
        act = act + r
    return jnp.maximum(act, 0.0)


# ------------------------------------- main -------------------------------------- #

if __name__ == "__main__":
    key = jax.random.PRNGKey(0)
    k_param, k_input = jax.random.split(key)

    in_channel, channel = 3, 32
    n_res_block, n_res_channel, stride = 2, 8, 4
    batch, hw = 16, 16

    params = init_encoder(k_param, in_channel, channel, n_res_block,
                          n_res_channel, stride)
    x = jax.random.normal(k_input, (batch, in_channel, hw, hw), jnp.float32)

    out = jax.block_until_ready(encoder_forward(params, x))

    # stride=4 encoder: 16x16 -> 4x4, out channels = `channel`
    assert out.shape == (batch, channel, hw // 4, hw // 4), out.shape
    assert bool(jnp.all(out >= 0.0))          # trailing ReLU

    # bf16 MXU inputs with f32 accumulation vs. the f32 reference: loose tolerance.
    ref = jax.block_until_ready(_ref_encoder(params, x))
    err = float(jnp.max(jnp.abs(out - ref)))
    assert err < 0.1, f"max abs error vs f32 reference: {err}"

    print("KERNEL_OK")
</pallas_src>

<mosaic_0001>
module attributes {stable_mosaic.version = 11 : i64} {
  func.func @_encoder_kernel(%arg0: i32, %arg1: memref<8x4x512xbf16, #tpu.memory_space<vmem>>, %arg2: memref<8x4x512xbf16, #tpu.memory_space<vmem>>, %arg3: memref<512x128xbf16, #tpu.memory_space<vmem>>, %arg4: memref<1x128xf32, #tpu.memory_space<vmem>>, %arg5: memref<512x128xbf16, #tpu.memory_space<vmem>>, %arg6: memref<1x128xf32, #tpu.memory_space<vmem>>, %arg7: memref<384x128xbf16, #tpu.memory_space<vmem>>, %arg8: memref<1x128xf32, #tpu.memory_space<vmem>>, %arg9: memref<384x32xbf16, #tpu.memory_space<vmem>>, %arg10: memref<1x32xf32, #tpu.memory_space<vmem>>, %arg11: memref<32x128xbf16, #tpu.memory_space<vmem>>, %arg12: memref<1x128xf32, #tpu.memory_space<vmem>>, %arg13: memref<384x32xbf16, #tpu.memory_space<vmem>>, %arg14: memref<1x32xf32, #tpu.memory_space<vmem>>, %arg15: memref<32x128xbf16, #tpu.memory_space<vmem>>, %arg16: memref<1x128xf32, #tpu.memory_space<vmem>>, %arg17: memref<8x4x128xf32, #tpu.memory_space<vmem>>) attributes {dimension_semantics = [#tpu.dimension_semantics<parallel>], iteration_bounds = array<i64: 2>, scalar_prefetch = 0 : i64, scratch_operands = 0 : i64, tpu.core_type = #tpu.core_type<tc>, window_params = [{transform_indices = @transform_0, window_bounds = array<i64: 8, 4, 512>}, {transform_indices = @transform_1, window_bounds = array<i64: 8, 4, 512>}, {pipeline_mode = #tpu.pipeline_mode<synchronous>, transform_indices = @transform_2, window_bounds = array<i64: 512, 128>}, {pipeline_mode = #tpu.pipeline_mode<synchronous>, transform_indices = @transform_3, window_bounds = array<i64: 1, 128>}, {pipeline_mode = #tpu.pipeline_mode<synchronous>, transform_indices = @transform_4, window_bounds = array<i64: 512, 128>}, {pipeline_mode = #tpu.pipeline_mode<synchronous>, transform_indices = @transform_5, window_bounds = array<i64: 1, 128>}, {pipeline_mode = #tpu.pipeline_mode<synchronous>, transform_indices = @transform_6, window_bounds = array<i64: 384, 128>}, {pipeline_mode = #tpu.pipeline_mode<synchronous>, transform_indices = @transform_7, window_bounds = array<i64: 1, 128>}, {pipeline_mode = #tpu.pipeline_mode<synchronous>, transform_indices = @transform_8, window_bounds = array<i64: 384, 32>}, {pipeline_mode = #tpu.pipeline_mode<synchronous>, transform_indices = @transform_9, window_bounds = array<i64: 1, 32>}, {pipeline_mode = #tpu.pipeline_mode<synchronous>, transform_indices = @transform_10, window_bounds = array<i64: 32, 128>}, {pipeline_mode = #tpu.pipeline_mode<synchronous>, transform_indices = @transform_11, window_bounds = array<i64: 1, 128>}, {pipeline_mode = #tpu.pipeline_mode<synchronous>, transform_indices = @transform_12, window_bounds = array<i64: 384, 32>}, {pipeline_mode = #tpu.pipeline_mode<synchronous>, transform_indices = @transform_13, window_bounds = array<i64: 1, 32>}, {pipeline_mode = #tpu.pipeline_mode<synchronous>, transform_indices = @transform_14, window_bounds = array<i64: 32, 128>}, {pipeline_mode = #tpu.pipeline_mode<synchronous>, transform_indices = @transform_15, window_bounds = array<i64: 1, 128>}, {transform_indices = @transform_16, window_bounds = array<i64: 8, 4, 128>}]} {
    %c0 = arith.constant 0 : index
    %c0_0 = arith.constant 0 : index
    %c0_1 = arith.constant 0 : index
    %0 = vector.load %arg1[%c0, %c0_0, %c0_1] : memref<8x4x512xbf16, #tpu.memory_space<vmem>>, vector<8x4x512xbf16>
    %1 = vector.shape_cast %0 : vector<8x4x512xbf16> to vector<32x512xbf16>
    %c0_2 = arith.constant 0 : index
    %c0_3 = arith.constant 0 : index
    %2 = vector.load %arg3[%c0_2, %c0_3] : memref<512x128xbf16, #tpu.memory_space<vmem>>, vector<512x128xbf16>
    %cst = arith.constant dense<0.000000e+00> : vector<32x128xf32>
    %3 = tpu.matmul %1, %2, %cst {dimension_numbers = #tpu.dot_dimension_numbers<[1], [0], [0], [1], [0, 0, 1, 1], [], []>} : vector<32x512xbf16>, vector<512x128xbf16>, vector<32x128xf32> -> vector<32x128xf32>
    %c0_4 = arith.constant 0 : index
    %c0_5 = arith.constant 0 : index
    %4 = vector.load %arg4[%c0_4, %c0_5] : memref<1x128xf32, #tpu.memory_space<vmem>>, vector<1x128xf32>
    %5 = vector.broadcast %4 : vector<1x128xf32> to vector<32x128xf32>
    %6 = arith.addf %3, %5 : vector<32x128xf32>
    %7 = vector.shape_cast %6 : vector<32x128xf32> to vector<8x4x128xf32>
    %cst_6 = arith.constant 0.000000e+00 : f32
    %8 = vector.broadcast %cst_6 : f32 to vector<8x4x128xf32>
    %9 = arith.maximumf %7, %8 : vector<8x4x128xf32>
    %c0_7 = arith.constant 0 : index
    %c0_8 = arith.constant 0 : index
    %c0_9 = arith.constant 0 : index
    %10 = vector.load %arg2[%c0_7, %c0_8, %c0_9] : memref<8x4x512xbf16, #tpu.memory_space<vmem>>, vector<8x4x512xbf16>
    %11 = vector.shape_cast %10 : vector<8x4x512xbf16> to vector<32x512xbf16>
    %c0_10 = arith.constant 0 : index
    %c0_11 = arith.constant 0 : index
    %12 = vector.load %arg3[%c0_10, %c0_11] : memref<512x128xbf16, #tpu.memory_space<vmem>>, vector<512x128xbf16>
    %cst_12 = arith.constant dense<0.000000e+00> : vector<32x128xf32>
    %13 = tpu.matmul %11, %12, %cst_12 {dimension_numbers = #tpu.dot_dimension_numbers<[1], [0], [0], [1], [0, 0, 1, 1], [], []>} : vector<32x512xbf16>, vector<512x128xbf16>, vector<32x128xf32> -> vector<32x128xf32>
    %c0_13 = arith.constant 0 : index
    %c0_14 = arith.constant 0 : index
    %14 = vector.load %arg4[%c0_13, %c0_14] : memref<1x128xf32, #tpu.memory_space<vmem>>, vector<1x128xf32>
    %15 = vector.broadcast %14 : vector<1x128xf32> to vector<32x128xf32>
    %16 = arith.addf %13, %15 : vector<32x128xf32>
    %17 = vector.shape_cast %16 : vector<32x128xf32> to vector<8x4x128xf32>
    %cst_15 = arith.constant 0.000000e+00 : f32
    %18 = vector.broadcast %cst_15 : f32 to vector<8x4x128xf32>
    %19 = arith.maximumf %17, %18 : vector<8x4x128xf32>
    %20 = arith.truncf %9 : vector<8x4x128xf32> to vector<8x4x128xbf16>
    %21 = arith.truncf %19 : vector<8x4x128xf32> to vector<8x4x128xbf16>
    %cst_16 = arith.constant 0.000000e+00 : bf16
    %22 = vector.broadcast %cst_16 : bf16 to vector<8x1x128xbf16>
    %23 = tpu.concatenate %22, %21 in 1 : vector<8x1x128xbf16>, vector<8x4x128xbf16> -> vector<8x5x128xbf16>
    %24 = tpu.concatenate %20, %22 in 1 : vector<8x4x128xbf16>, vector<8x1x128xbf16> -> vector<8x5x128xbf16>
    %25 = vector.extract_strided_slice %23 {offsets = [0, 0, 0], sizes = [8, 4, 128], strides = [1, 1, 1]} : vector<8x5x128xbf16> to vector<8x4x128xbf16>
    %26 = vector.extract_strided_slice %24 {offsets = [0, 0, 0], sizes = [8, 4, 128], strides = [1, 1, 1]} : vector<8x5x128xbf16> to vector<8x4x128xbf16>
    %27 = vector.extract_strided_slice %23 {offsets = [0, 1, 0], sizes = [8, 4, 128], strides = [1, 1, 1]} : vector<8x5x128xbf16> to vector<8x4x128xbf16>
    %28 = vector.extract_strided_slice %24 {offsets = [0, 1, 0], sizes = [8, 4, 128], strides = [1, 1, 1]} : vector<8x5x128xbf16> to vector<8x4x128xbf16>
    %29 = tpu.concatenate %25, %26, %27, %28 in 2 : vector<8x4x128xbf16>, vector<8x4x128xbf16>, vector<8x4x128xbf16>, vector<8x4x128xbf16> -> vector<8x4x512xbf16>
    %30 = vector.shape_cast %29 : vector<8x4x512xbf16> to vector<32x512xbf16>
    %c0_17 = arith.constant 0 : index
    %c0_18 = arith.constant 0 : index
    %31 = vector.load %arg5[%c0_17, %c0_18] : memref<512x128xbf16, #tpu.memory_space<vmem>>, vector<512x128xbf16>
    %cst_19 = arith.constant dense<0.000000e+00> : vector<32x128xf32>
    %32 = tpu.matmul %30, %31, %cst_19 {dimension_numbers = #tpu.dot_dimension_numbers<[1], [0], [0], [1], [0, 0, 1, 1], [], []>} : vector<32x512xbf16>, vector<512x128xbf16>, vector<32x128xf32> -> vector<32x128xf32>
    %c0_20 = arith.constant 0 : index
    %c0_21 = arith.constant 0 : index
    %33 = vector.load %arg6[%c0_20, %c0_21] : memref<1x128xf32, #tpu.memory_space<vmem>>, vector<1x128xf32>
    %34 = vector.broadcast %33 : vector<1x128xf32> to vector<32x128xf32>
    %35 = arith.addf %32, %34 : vector<32x128xf32>
    %36 = vector.shape_cast %35 : vector<32x128xf32> to vector<8x4x128xf32>
    %cst_22 = arith.constant 0.000000e+00 : f32
    %37 = vector.broadcast %cst_22 : f32 to vector<8x4x128xf32>
    %38 = arith.maximumf %36, %37 : vector<8x4x128xf32>
    %39 = arith.truncf %38 : vector<8x4x128xf32> to vector<8x4x128xbf16>
    %cst_23 = arith.constant 0.000000e+00 : bf16
    %40 = vector.broadcast %cst_23 : bf16 to vector<8x1x128xbf16>
    %41 = tpu.concatenate %40, %39, %40 in 1 : vector<8x1x128xbf16>, vector<8x4x128xbf16>, vector<8x1x128xbf16> -> vector<8x6x128xbf16>
    %42 = vector.extract_strided_slice %41 {offsets = [0, 0, 0], sizes = [8, 4, 128], strides = [1, 1, 1]} : vector<8x6x128xbf16> to vector<8x4x128xbf16>
    %43 = vector.extract_strided_slice %41 {offsets = [0, 1, 0], sizes = [8, 4, 128], strides = [1, 1, 1]} : vector<8x6x128xbf16> to vector<8x4x128xbf16>
    %44 = vector.extract_strided_slice %41 {offsets = [0, 2, 0], sizes = [8, 4, 128], strides = [1, 1, 1]} : vector<8x6x128xbf16> to vector<8x4x128xbf16>
    %45 = tpu.concatenate %42, %43, %44 in 2 : vector<8x4x128xbf16>, vector<8x4x128xbf16>, vector<8x4x128xbf16> -> vector<8x4x384xbf16>
    %46 = vector.shape_cast %45 : vector<8x4x384xbf16> to vector<32x384xbf16>
    %c0_24 = arith.constant 0 : index
    %c0_25 = arith.constant 0 : index
    %47 = vector.load %arg7[%c0_24, %c0_25] : memref<384x128xbf16, #tpu.memory_space<vmem>>, vector<384x128xbf16>
    %cst_26 = arith.constant dense<0.000000e+00> : vector<32x128xf32>
    %48 = tpu.matmul %46, %47, %cst_26 {dimension_numbers = #tpu.dot_dimension_numbers<[1], [0], [0], [1], [0, 0, 1, 1], [], []>} : vector<32x384xbf16>, vector<384x128xbf16>, vector<32x128xf32> -> vector<32x128xf32>
    %c0_27 = arith.constant 0 : index
    %c0_28 = arith.constant 0 : index
    %49 = vector.load %arg8[%c0_27, %c0_28] : memref<1x128xf32, #tpu.memory_space<vmem>>, vector<1x128xf32>
    %50 = vector.broadcast %49 : vector<1x128xf32> to vector<32x128xf32>
    %51 = arith.addf %48, %50 : vector<32x128xf32>
    %52 = vector.shape_cast %51 : vector<32x128xf32> to vector<8x4x128xf32>
    %cst_29 = arith.constant 0.000000e+00 : f32
    %53 = vector.broadcast %cst_29 : f32 to vector<8x4x128xf32>
    %54 = arith.maximumf %52, %53 : vector<8x4x128xf32>
    %55 = arith.truncf %54 : vector<8x4x128xf32> to vector<8x4x128xbf16>
    %cst_30 = arith.constant 0.000000e+00 : bf16
    %56 = vector.broadcast %cst_30 : bf16 to vector<8x1x128xbf16>
    %57 = tpu.concatenate %56, %55, %56 in 1 : vector<8x1x128xbf16>, vector<8x4x128xbf16>, vector<8x1x128xbf16> -> vector<8x6x128xbf16>
    %58 = vector.extract_strided_slice %57 {offsets = [0, 0, 0], sizes = [8, 4, 128], strides = [1, 1, 1]} : vector<8x6x128xbf16> to vector<8x4x128xbf16>
    %59 = vector.extract_strided_slice %57 {offsets = [0, 1, 0], sizes = [8, 4, 128], strides = [1, 1, 1]} : vector<8x6x128xbf16> to vector<8x4x128xbf16>
    %60 = vector.extract_strided_slice %57 {offsets = [0, 2, 0], sizes = [8, 4, 128], strides = [1, 1, 1]} : vector<8x6x128xbf16> to vector<8x4x128xbf16>
    %61 = tpu.concatenate %58, %59, %60 in 2 : vector<8x4x128xbf16>, vector<8x4x128xbf16>, vector<8x4x128xbf16> -> vector<8x4x384xbf16>
    %62 = vector.shape_cast %61 : vector<8x4x384xbf16> to vector<32x384xbf16>
    %c0_31 = arith.constant 0 : index
    %c0_32 = arith.constant 0 : index
    %63 = vector.load %arg9[%c0_31, %c0_32] : memref<384x32xbf16, #tpu.memory_space<vmem>>, vector<384x32xbf16>
    %cst_33 = arith.constant dense<0.000000e+00> : vector<32x32xf32>
    %64 = tpu.matmul %62, %63, %cst_33 {dimension_numbers = #tpu.dot_dimension_numbers<[1], [0], [0], [1], [0, 0, 1, 1], [], []>} : vector<32x384xbf16>, vector<384x32xbf16>, vector<32x32xf32> -> vector<32x32xf32>
    %c0_34 = arith.constant 0 : index
    %c0_35 = arith.constant 0 : index
    %65 = vector.load %arg10[%c0_34, %c0_35] : memref<1x32xf32, #tpu.memory_space<vmem>>, vector<1x32xf32>
    %66 = vector.broadcast %65 : vector<1x32xf32> to vector<32x32xf32>
    %67 = arith.addf %64, %66 : vector<32x32xf32>
    %68 = vector.shape_cast %67 : vector<32x32xf32> to vector<8x4x32xf32>
    %cst_36 = arith.constant 0.000000e+00 : f32
    %69 = vector.broadcast %cst_36 : f32 to vector<8x4x32xf32>
    %70 = arith.maximumf %68, %69 : vector<8x4x32xf32>
    %71 = arith.truncf %70 : vector<8x4x32xf32> to vector<8x4x32xbf16>
    %72 = vector.shape_cast %71 : vector<8x4x32xbf16> to vector<32x32xbf16>
    %c0_37 = arith.constant 0 : index
    %c0_38 = arith.constant 0 : index
    %73 = vector.load %arg11[%c0_37, %c0_38] : memref<32x128xbf16, #tpu.memory_space<vmem>>, vector<32x128xbf16>
    %cst_39 = arith.constant dense<0.000000e+00> : vector<32x128xf32>
    %74 = tpu.matmul %72, %73, %cst_39 {dimension_numbers = #tpu.dot_dimension_numbers<[1], [0], [0], [1], [0, 0, 1, 1], [], []>} : vector<32x32xbf16>, vector<32x128xbf16>, vector<32x128xf32> -> vector<32x128xf32>
    %c0_40 = arith.constant 0 : index
    %c0_41 = arith.constant 0 : index
    %75 = vector.load %arg12[%c0_40, %c0_41] : memref<1x128xf32, #tpu.memory_space<vmem>>, vector<1x128xf32>
    %76 = vector.broadcast %75 : vector<1x128xf32> to vector<32x128xf32>
    %77 = arith.addf %74, %76 : vector<32x128xf32>
    %78 = vector.shape_cast %77 : vector<32x128xf32> to vector<8x4x128xf32>
    %79 = arith.addf %52, %78 : vector<8x4x128xf32>
    %cst_42 = arith.constant 0.000000e+00 : f32
    %80 = vector.broadcast %cst_42 : f32 to vector<8x4x128xf32>
    %81 = arith.maximumf %79, %80 : vector<8x4x128xf32>
    %82 = arith.truncf %81 : vector<8x4x128xf32> to vector<8x4x128xbf16>
    %cst_43 = arith.constant 0.000000e+00 : bf16
    %83 = vector.broadcast %cst_43 : bf16 to vector<8x1x128xbf16>
    %84 = tpu.concatenate %83, %82, %83 in 1 : vector<8x1x128xbf16>, vector<8x4x128xbf16>, vector<8x1x128xbf16> -> vector<8x6x128xbf16>
    %85 = vector.extract_strided_slice %84 {offsets = [0, 0, 0], sizes = [8, 4, 128], strides = [1, 1, 1]} : vector<8x6x128xbf16> to vector<8x4x128xbf16>
    %86 = vector.extract_strided_slice %84 {offsets = [0, 1, 0], sizes = [8, 4, 128], strides = [1, 1, 1]} : vector<8x6x128xbf16> to vector<8x4x128xbf16>
    %87 = vector.extract_strided_slice %84 {offsets = [0, 2, 0], sizes = [8, 4, 128], strides = [1, 1, 1]} : vector<8x6x128xbf16> to vector<8x4x128xbf16>
    %88 = tpu.concatenate %85, %86, %87 in 2 : vector<8x4x128xbf16>, vector<8x4x128xbf16>, vector<8x4x128xbf16> -> vector<8x4x384xbf16>
    %89 = vector.shape_cast %88 : vector<8x4x384xbf16> to vector<32x384xbf16>
    %c0_44 = arith.constant 0 : index
    %c0_45 = arith.constant 0 : index
    %90 = vector.load %arg13[%c0_44, %c0_45] : memref<384x32xbf16, #tpu.memory_space<vmem>>, vector<384x32xbf16>
    %cst_46 = arith.constant dense<0.000000e+00> : vector<32x32xf32>
    %91 = tpu.matmul %89, %90, %cst_46 {dimension_numbers = #tpu.dot_dimension_numbers<[1], [0], [0], [1], [0, 0, 1, 1], [], []>} : vector<32x384xbf16>, vector<384x32xbf16>, vector<32x32xf32> -> vector<32x32xf32>
    %c0_47 = arith.constant 0 : index
    %c0_48 = arith.constant 0 : index
    %92 = vector.load %arg14[%c0_47, %c0_48] : memref<1x32xf32, #tpu.memory_space<vmem>>, vector<1x32xf32>
    %93 = vector.broadcast %92 : vector<1x32xf32> to vector<32x32xf32>
    %94 = arith.addf %91, %93 : vector<32x32xf32>
    %95 = vector.shape_cast %94 : vector<32x32xf32> to vector<8x4x32xf32>
    %cst_49 = arith.constant 0.000000e+00 : f32
    %96 = vector.broadcast %cst_49 : f32 to vector<8x4x32xf32>
    %97 = arith.maximumf %95, %96 : vector<8x4x32xf32>
    %98 = arith.truncf %97 : vector<8x4x32xf32> to vector<8x4x32xbf16>
    %99 = vector.shape_cast %98 : vector<8x4x32xbf16> to vector<32x32xbf16>
    %c0_50 = arith.constant 0 : index
    %c0_51 = arith.constant 0 : index
    %100 = vector.load %arg15[%c0_50, %c0_51] : memref<32x128xbf16, #tpu.memory_space<vmem>>, vector<32x128xbf16>
    %cst_52 = arith.constant dense<0.000000e+00> : vector<32x128xf32>
    %101 = tpu.matmul %99, %100, %cst_52 {dimension_numbers = #tpu.dot_dimension_numbers<[1], [0], [0], [1], [0, 0, 1, 1], [], []>} : vector<32x32xbf16>, vector<32x128xbf16>, vector<32x128xf32> -> vector<32x128xf32>
    %c0_53 = arith.constant 0 : index
    %c0_54 = arith.constant 0 : index
    %102 = vector.load %arg16[%c0_53, %c0_54] : memref<1x128xf32, #tpu.memory_space<vmem>>, vector<1x128xf32>
    %103 = vector.broadcast %102 : vector<1x128xf32> to vector<32x128xf32>
    %104 = arith.addf %101, %103 : vector<32x128xf32>
    %105 = vector.shape_cast %104 : vector<32x128xf32> to vector<8x4x128xf32>
    %106 = arith.addf %79, %105 : vector<8x4x128xf32>
    %cst_55 = arith.constant 0.000000e+00 : f32
    %107 = vector.broadcast %cst_55 : f32 to vector<8x4x128xf32>
    %108 = arith.maximumf %106, %107 : vector<8x4x128xf32>
    %c0_56 = arith.constant 0 : index
    %c0_57 = arith.constant 0 : index
    %c0_58 = arith.constant 0 : index
    %109 = vector.load %arg17[%c0_56, %c0_57, %c0_58] : memref<8x4x128xf32, #tpu.memory_space<vmem>>, vector<8x4x128xf32>
    tpu.vector_store %arg17[%c0_56, %c0_57, %c0_58], %108 {strides = array<i32>} : memref<8x4x128xf32, #tpu.memory_space<vmem>>, vector<8x4x128xf32>,
    return
  }
  func.func @transform_0(%arg0: i32) -> (i32, i32, i32) {
    %c0_i32 = arith.constant 0 : i32
    %c0_i32_0 = arith.constant 0 : i32
    %c0_i32_1 = arith.constant 0 : i32
    return %arg0, %c0_i32, %c0_i32_0 : i32, i32, i32
  }
  func.func @transform_1(%arg0: i32) -> (i32, i32, i32) {
    %c0_i32 = arith.constant 0 : i32
    %c0_i32_0 = arith.constant 0 : i32
    %c0_i32_1 = arith.constant 0 : i32
    return %arg0, %c0_i32, %c0_i32_0 : i32, i32, i32
  }
  func.func @transform_2(%arg0: i32) -> (i32, i32) {
    %c0_i32 = arith.constant 0 : i32
    %c0_i32_0 = arith.constant 0 : i32
    %c0_i32_1 = arith.constant 0 : i32
    return %c0_i32, %c0_i32_0 : i32, i32
  }
  func.func @transform_3(%arg0: i32) -> (i32, i32) {
    %c0_i32 = arith.constant 0 : i32
    %c0_i32_0 = arith.constant 0 : i32
    %c0_i32_1 = arith.constant 0 : i32
    return %c0_i32, %c0_i32_0 : i32, i32
  }
  func.func @transform_4(%arg0: i32) -> (i32, i32) {
    %c0_i32 = arith.constant 0 : i32
    %c0_i32_0 = arith.constant 0 : i32
    %c0_i32_1 = arith.constant 0 : i32
    return %c0_i32, %c0_i32_0 : i32, i32
  }
  func.func @transform_5(%arg0: i32) -> (i32, i32) {
    %c0_i32 = arith.constant 0 : i32
    %c0_i32_0 = arith.constant 0 : i32
    %c0_i32_1 = arith.constant 0 : i32
    return %c0_i32, %c0_i32_0 : i32, i32
  }
  func.func @transform_6(%arg0: i32) -> (i32, i32) {
    %c0_i32 = arith.constant 0 : i32
    %c0_i32_0 = arith.constant 0 : i32
    %c0_i32_1 = arith.constant 0 : i32
    return %c0_i32, %c0_i32_0 : i32, i32
  }
  func.func @transform_7(%arg0: i32) -> (i32, i32) {
    %c0_i32 = arith.constant 0 : i32
    %c0_i32_0 = arith.constant 0 : i32
    %c0_i32_1 = arith.constant 0 : i32
    return %c0_i32, %c0_i32_0 : i32, i32
  }
  func.func @transform_8(%arg0: i32) -> (i32, i32) {
    %c0_i32 = arith.constant 0 : i32
    %c0_i32_0 = arith.constant 0 : i32
    %c0_i32_1 = arith.constant 0 : i32
    return %c0_i32, %c0_i32_0 : i32, i32
  }
  func.func @transform_9(%arg0: i32) -> (i32, i32) {
    %c0_i32 = arith.constant 0 : i32
    %c0_i32_0 = arith.constant 0 : i32
    %c0_i32_1 = arith.constant 0 : i32
    return %c0_i32, %c0_i32_0 : i32, i32
  }
  func.func @transform_10(%arg0: i32) -> (i32, i32) {
    %c0_i32 = arith.constant 0 : i32
    %c0_i32_0 = arith.constant 0 : i32
    %c0_i32_1 = arith.constant 0 : i32
    return %c0_i32, %c0_i32_0 : i32, i32
  }
  func.func @transform_11(%arg0: i32) -> (i32, i32) {
    %c0_i32 = arith.constant 0 : i32
    %c0_i32_0 = arith.constant 0 : i32
    %c0_i32_1 = arith.constant 0 : i32
    return %c0_i32, %c0_i32_0 : i32, i32
  }
  func.func @transform_12(%arg0: i32) -> (i32, i32) {
    %c0_i32 = arith.constant 0 : i32
    %c0_i32_0 = arith.constant 0 : i32
    %c0_i32_1 = arith.constant 0 : i32
    return %c0_i32, %c0_i32_0 : i32, i32
  }
  func.func @transform_13(%arg0: i32) -> (i32, i32) {
    %c0_i32 = arith.constant 0 : i32
    %c0_i32_0 = arith.constant 0 : i32
    %c0_i32_1 = arith.constant 0 : i32
    return %c0_i32, %c0_i32_0 : i32, i32
  }
  func.func @transform_14(%arg0: i32) -> (i32, i32) {
    %c0_i32 = arith.constant 0 : i32
    %c0_i32_0 = arith.constant 0 : i32
    %c0_i32_1 = arith.constant 0 : i32
    return %c0_i32, %c0_i32_0 : i32, i32
  }
  func.func @transform_15(%arg0: i32) -> (i32, i32) {
    %c0_i32 = arith.constant 0 : i32
    %c0_i32_0 = arith.constant 0 : i32
    %c0_i32_1 = arith.constant 0 : i32
    return %c0_i32, %c0_i32_0 : i32, i32
  }
  func.func @transform_16(%arg0: i32) -> (i32, i32, i32) {
    %c0_i32 = arith.constant 0 : i32
    %c0_i32_0 = arith.constant 0 : i32
    %c0_i32_1 = arith.constant 0 : i32
    return %arg0, %c0_i32, %c0_i32_0 : i32, i32, i32
  }
}

</mosaic_0001>

<bundles_post_ra>
// kernel: tpu_custom_call.1
= control target key start
LH: loop header
LB: loop body
LE: loop exit
PB: predicated region body
PF: predicated region fallthrough
CT: control target
= control target key end

     0   :  { %s7141_s0 = inlined_call_operand.hbm [shape: bf16[16,4,512], index: 0, kind: input, shape index: {}]   ;;  %s7142_s1 = inlined_call_operand.hbm [shape: bf16[16,4,512], index: 1, kind: input, shape index: {}]   ;;  %s7143_s2 = inlined_call_operand.vmem [shape: bf16[512,128], index: 2, kind: input, shape index: {}]   ;;  %s7144_s3 = inlined_call_operand.vmem [shape: f32[1,128], index: 3, kind: input, shape index: {}]   ;;  %s7145_s4 = inlined_call_operand.hbm [shape: bf16[512,128], index: 4, kind: input, shape index: {}]   ;;  %s7146_s5 = inlined_call_operand.vmem [shape: f32[1,128], index: 5, kind: input, shape index: {}]   ;;  %s7147_s6 = inlined_call_operand.vmem [shape: bf16[384,128], index: 6, kind: input, shape index: {}]   ;;  %s7148_s7 = inlined_call_operand.vmem [shape: f32[1,128], index: 7, kind: input, shape index: {}]   ;;  %s7149_s8 = inlined_call_operand.vmem [shape: bf16[384,32], index: 8, kind: input, shape index: {}]   ;;  %s7150_s9 = inlined_call_operand.vmem [shape: f32[1,32], index: 9, kind: input, shape index: {}]   ;;  %s7151_s10 = inlined_call_operand.vmem [shape: bf16[32,128], index: 10, kind: input, shape index: {}]   ;;  %s7152_s11 = inlined_call_operand.vmem [shape: f32[1,128], index: 11, kind: input, shape index: {}]   ;;  %s7153_s12 = inlined_call_operand.vmem [shape: bf16[384,32], index: 12, kind: input, shape index: {}]   ;;  %s7154_s13 = inlined_call_operand.hbm [shape: f32[1,32], index: 13, kind: input, shape index: {}]   ;;  %s7155_s14 = inlined_call_operand.vmem [shape: bf16[32,128], index: 14, kind: input, shape index: {}]   ;;  %s7156_s15 = inlined_call_operand.hbm [shape: f32[1,128], index: 15, kind: input, shape index: {}]   ;;  %s7157_s16 = inlined_call_operand.hbm [shape: f32[16,4,128], index: 16, kind: output, shape index: {}]  }
   0x1   :  { %7170 = sst [smem:[#allocation19_spill]] %s7141_s0 }
   0x2   :  { %7171 = sst [smem:[#allocation20_spill]] %s7145_s4 }
   0x3   :  { %7172 = sst [smem:[#allocation21_spill]] %s7148_s7 }
   0x4   :  { %7173 = sst [smem:[#allocation22_spill]] %s7150_s9 }
   0x5   :  { %7174 = sst [smem:[#allocation23_spill]] %s7151_s10 }
   0x6   :  { %7175 = sst [smem:[#allocation24_spill]] %s7152_s11 }
   0x7   :  { %7176 = sst [smem:[#allocation25_spill]] %s7153_s12 }
   0x8   :  { %7177 = sst [smem:[#allocation26_spill]] %s7154_s13 }
   0x9   :  { %7178 = sst [smem:[#allocation27_spill]] %s7155_s14 }
   0xa   :  { %7179 = sst [smem:[#allocation28_spill]] %s7156_s15 }
   0xb   :  { %7180 = sst [smem:[#allocation29_spill]] %s7157_s16 }
   0xc   :  { %21 = vsyncpa [#allocation3], 0 }
   0xd   :  { %23 = vsyncpa [#allocation3 + $0x1], 0 }
   0xe   :  { %24 = vsyncpa [#allocation6], 0 }
   0xf   :  { %26 = vsyncpa [#allocation6 + $0x1], 0 }
  0x10   :  { %27 = vsyncpa [#allocation9], 0 }
  0x11   :  { %28 = vsyncpa [#allocation4], 0 }
  0x12   :  { %30 = vsyncpa [#allocation4 + $0x1], 0  ;;  %s5810_s21 = smov 0   ;;  %s5812_s22 = smov 0  }
  0x13   :  { %s5814_s23 = smov 0   ;;  %s5816_s24 = smov 0  }
  0x14 LB: > { %7181 = sst [smem:[#allocation17_spill]] %s5698_s21  ;;  %s5831_s25 = sadd.s32 4294967295, %s5710_s24   ;;  %s5710_s24 = sphi %s5816_s24, %s7220_s24   ;;  %s5706_s23 = sphi %s5814_s23, %s7219_s23   ;;  %s5702_s22 = sphi %s5812_s22, %s7218_s22   ;;  %s5698_s21 = sphi %s5810_s21, %s7217_s21  }
  0x15   : > { %s4647_s26 = sadd.s32 4294967294, %s5710_s24   ;;  %p56_p0 = scmp.ne.s32.totalorder %s5702_s22, %s5698_s21 }
  0x16   : > { %p7163_p1 = scmp.eq.s32.totalorder %s5831_s25, 0  ;;  %p406_p3 = scmp.eq.s32.totalorder %s4647_s26, 1 }
  0x17   : > { %p4648_p5 = scmp.ge.s32.totalorder %s5710_s24, 1  ;;  %p413_p7 = scmp.lt.s32.totalorder %s5710_s24, 3 }
  0x18   : > { %p5840_p4 = por %p7163_p1, %p56_p0  ;;  %p5845_p6 = por %p406_p3, %p56_p0 }
  0x19   : > { %p5850_p8 = pnand %p4648_p5, %p413_p7  ;;  %s5712_s30 = smov [#allocation7]  }
  0x1a   : > { %s7182_s27 = scalar_select %p5840_p4, 1, 0 }
  0x1b   : > { %s7183_s28 = scalar_select %p5845_p6, 1, 0 }
  0x1c   : > { %s7185_s29 = scalar_select %p5850_p8, 1, 0 }
  0x1d   : > { %7184 = sst [smem:[#allocation18_spill]] %s7183_s28  ;;  %s431_s0 = sshll.u32 %s5712_s30, 4  ;;  %s5854_s0 = int_to_ptr.vmem [resolvable:$true] %s431_s0 }
  0x1e   : > { %p5253_p9 = pneg %p5850_p8  ;;  %s5713_s18 = smov [#allocation8]  }
  0x1f   : > { %s469_s19 = sshll.u32 %s5713_s18, 4  ;;  %s5714_s20 = smov [#allocation10]   ;;  %s5865_s19 = int_to_ptr.vmem [resolvable:$true] %s469_s19 }
  0x20   : > { %p5861_p11 = pnand %p5253_p9, %p7163_p1  ;;  %s5867_s26 = sshll.u32 %s5714_s20, 4  ;;  %s484_s26 = int_to_ptr.vmem [resolvable:$true] %s5867_s26 }
  0x21   : > { %s7187_s4 = sld [smem:[#allocation20_spill]] }
  0x22   : > { %p5877_p13 = pneg %p5861_p11 }
  0x27   : > { %s5488_s21 = scalar_lea.hbm %s7187_s4, 4096 }
  0x28   : > { %p5489_p12 = scmp.ne.s32.totalorder %s7187_s4, %s5488_s21  ;;  %p5495_p5 = scmp.lt.u32.totalorder %s5488_s21, %s7187_s4 }
  0x2a   : > { %p5491_p0 = pnand %p5877_p13, %p5489_p12 }
  0x2c   : > { %p5492_p3 = pneg %p5491_p0 }
  0x2e   : > { %p5497_p7 = pnand %p5495_p5, %p5492_p3 }
  0x30   : > { %5500 = shalt.err (!%p5497_p7)
}
  0x31   : > { %s5501_s14 = scalar_lea.vmem %s5854_s0, 4096  ;;  %p5509_p2 = scmp.lt.s32.totalorder %s5854_s0, %s5854_s0 }
  0x32   : > { %p5502_p9 = scmp.ne.s32.totalorder %s5854_s0, %s5501_s14  ;;  %p5510_p6 = scmp.lt.s32.totalorder %s5501_s14, %s5501_s14 }
  0x34   : > { %p5504_p10 = pnand %p5502_p9, %p5877_p13  ;;  %p5511_p12 = por %p5510_p6, %p5509_p2 }
  0x36   : > { %p5505_p1 = pneg %p5504_p10 }
  0x38   : > { %p5512_p0 = pnand %p5511_p12, %p5505_p1 }
  0x3a   : > { %5515 = shalt.err (!%p5512_p0)
}
  0x3b   : > { %s5715_s16 = smov 64   ;;  %s5716_s21 = smov 4  }
  0x3c   : > { %5256 = dma.hbm_to_vmem [thread:$0]  (!%p5861_p11), %s7187_s4, 4096, %s5854_s0, [#allocation6], %s5715_s16, %s5715_s16, %s5716_s21  }
  0x3d   : > { %s7189_s13 = sld [smem:[#allocation26_spill]] }
  0x43   : > { %s5516_s12 = scalar_lea.hbm %s7189_s13, 16 }
  0x44   : > { %p5517_p2 = scmp.ne.s32.totalorder %s7189_s13, %s5516_s12  ;;  %p5523_p10 = scmp.lt.u32.totalorder %s5516_s12, %s7189_s13 }
  0x46   : > { %p5519_p1 = pnand %p5517_p2, %p5877_p13 }
  0x48   : > { %p5520_p6 = pneg %p5519_p1 }
  0x4a   : > { %p5525_p3 = pnand %p5523_p10, %p5520_p6 }
  0x4c   : > { %5528 = shalt.err (!%p5525_p3)
}
  0x4d   : > { %s5529_s0 = scalar_lea.vmem %s5865_s19, 16  ;;  %s5536_s9 = scalar_lea.vmem %s5865_s19, 32 }
  0x4e   : > { %p5530_p5 = scmp.ne.s32.totalorder %s5865_s19, %s5529_s0  ;;  %p5537_p12 = scmp.lt.s32.totalorder %s5865_s19, %s5865_s19 }
  0x4f   : > { %p5538_p0 = scmp.lt.s32.totalorder %s5536_s9, %s5529_s0 }
  0x50   : > { %p5532_p7 = pnand %p5530_p5, %p5877_p13 }
  0x51   : > { %p5539_p2 = por %p5538_p0, %p5537_p12 }
  0x52   : > { %p5533_p9 = pneg %p5532_p7 }
  0x54   : > { %p5540_p1 = pnand %p5539_p2, %p5533_p9 }
  0x56   : > { %5543 = shalt.err (!%p5540_p1)
}
  0x57   : > { %5259 = dma.hbm_to_vmem [thread:$0]  (!%p5861_p11), %s7189_s13, 16, %s5865_s19, [#allocation9]  }
  0x58   : > { %s7190_s15 = sld [smem:[#allocation28_spill]] }
  0x5e   : > { %s5544_s21 = scalar_lea.hbm %s7190_s15, 16 }
  0x5f   : > { %p5545_p6 = scmp.ne.s32.totalorder %s7190_s15, %s5544_s21  ;;  %p5551_p5 = scmp.lt.u32.totalorder %s5544_s21, %s7190_s15 }
  0x61   : > { %p5547_p10 = pnand %p5545_p6, %p5877_p13 }
  0x63   : > { %p5548_p3 = pneg %p5547_p10 }
  0x65   : > { %p5553_p7 = pnand %p5551_p5, %p5548_p3 }
  0x67   : > { %5556 = shalt.err (!%p5553_p7)
}
  0x68   : > { %s5557_s14 = scalar_lea.vmem %s484_s26, 16  ;;  %s5564_s19 = scalar_lea.vmem %s484_s26, 32 }
  0x69   : > { %p5558_p9 = scmp.ne.s32.totalorder %s484_s26, %s5557_s14  ;;  %p5565_p2 = scmp.lt.s32.totalorder %s484_s26, %s484_s26 }
  0x6a   : > { %p5566_p1 = scmp.lt.s32.totalorder %s5564_s19, %s5557_s14 }
  0x6b   : > { %p5560_p12 = pnand %p5558_p9, %p5877_p13 }
  0x6c   : > { %p5567_p4 = por %p5566_p1, %p5565_p2 }
  0x6d   : > { %p5561_p0 = pneg %p5560_p12 }
  0x6f   : > { %p5568_p8 = pnand %p5567_p4, %p5561_p0 }
  0x71   : > { %5571 = shalt.err (!%p5568_p8)
}
  0x72   : > { %5262 = dma.hbm_to_vmem [thread:$0]  (!%p5861_p11), %s7190_s15, 16, %s484_s26, [#allocation9]  }
  0x73   : > { %s5942_s11 = sadd.s32 1, %s5710_s24   ;;  %s43_s7 = sadd.s32 1, %s5706_s23 }
  0x74   : > { %s40_s17 = ssub.s32 %s5710_s24, %s5942_s11  ;;  %p50_p8 = scmp.ne.s32.totalorder %s5706_s23, %s5702_s22 }
  0x75   : > { %p41_p4 = scmp.eq.s32.totalorder %s40_s17, 0  ;;  %p51_p13 = scmp.eq.s32.totalorder %s5710_s24, 0 }
  0x76   : > { %p5277_p6 = scmp.lt.s32.totalorder %s5710_s24, 2  ;;  %p7191_p3 = scmp.eq.s32.totalorder %s5831_s25, 1 }
  0x77   : > { %s5952_s10 = scalar_select %p41_p4, %s5706_s23, %s43_s7  }
  0x78   : > { %p52_p10 = por %p51_p13, %p50_p8  ;;  %p5956_p5 = por %p7191_p3, %p50_p8 }
  0x79   : > { %s494_s16 = sand.u32 1, %s5706_s23   ;;  %s7168_s21 = sshll.u32 %s5710_s24, 10 }
  0x7a   : > { %s5962_s26 = sshll.u32 %s494_s16, 6  ;;  %s7193_s18 = sld [smem:[#allocation19_spill]] }
  0x7b   : > { %s498_s14 = scalar_lea.vmem [#allocation2], %s5962_s26  ;;  %p5972_p11 = pnand %p5277_p6, %p52_p10 }
  0x7c   : > { %s506_s19 = sshll.u32 %s498_s14, 4  ;;  %s5978_s9 = scalar_lea.sflag [#allocation3], %s494_s16  ;;  %s5976_s19 = int_to_ptr.vmem [resolvable:$true] %s506_s19 }
  0x7d   : > { %p5574_p9 = pneg %p5972_p11 }
  0x80   : > { %s5969_s20 = scalar_lea.hbm %s7193_s18, %s7168_s21  ;;  %s5577_s30 = scalar_lea.hbm %s7193_s18, 2048 }
  0x81   : > { %s5572_s17 = scalar_lea.hbm %s5969_s20, 1024  ;;  %p5578_p2 = scmp.lt.u32.totalorder %s5969_s20, %s7193_s18 }
  0x82   : > { %p5573_p7 = scmp.ne.s32.totalorder %s5969_s20, %s5572_s17  ;;  %p5579_p1 = scmp.lt.u32.totalorder %s5577_s30, %s5572_s17 }
  0x83   : > { %p5581_p8 = scmp.lt.u32.totalorder %s5572_s17, %s5969_s20 }
  0x84   : > { %p5575_p12 = pnand %p5574_p9, %p5573_p7  ;;  %p5580_p4 = por %p5579_p1, %p5578_p2 }
  0x86   : > { %p5576_p0 = pneg %p5575_p12  ;;  %p5582_p13 = por %p5581_p8, %p5580_p4 }
  0x88   : > { %p5583_p6 = pnand %p5582_p13, %p5576_p0 }
  0x8a   : > { %5586 = shalt.err (!%p5583_p6)
}
  0x8b   : > { %s5587_s16 = scalar_lea.vmem %s5976_s19, 1024  ;;  %s5717_s7 = smov [#allocation2]  }
  0x8c   : > { %p5588_p10 = scmp.ne.s32.totalorder %s5976_s19, %s5587_s16  ;;  %s5592_s28 = sshll.u32 %s5717_s7, 4  ;;  %s5593_s28 = int_to_ptr.vmem [resolvable:$false] %s5592_s28 }
  0x8d   : > { %s5594_s21 = scalar_lea.vmem %s5593_s28, 2048  ;;  %p5595_p12 = scmp.lt.s32.totalorder %s5976_s19, %s5593_s28 }
  0x8e   : > { %p5590_p3 = pnand %p5588_p10, %p5574_p9  ;;  %p5596_p2 = scmp.lt.s32.totalorder %s5594_s21, %s5587_s16 }
  0x90   : > { %p5591_p7 = pneg %p5590_p3  ;;  %p5597_p1 = por %p5596_p2, %p5595_p12 }
  0x92   : > { %p5598_p4 = pnand %p5597_p1, %p5591_p7 }
  0x94   : > { %5601 = shalt.err (!%p5598_p4)
}
  0x95   : > { %s5718_s17 = smov 128   ;;  %s5719_s30 = smov 8  }
  0x96   : > { %5266 = dma.hbm_to_vmem [thread:$0]  (!%p5972_p11), %s5969_s20, 1024, %s5976_s19, %s5978_s9, %s5718_s17, %s5718_s17, %s5719_s30  }
  0x97   : > { %s7195_s14 = sshll.u32 %s5710_s24, 10  ;;  %s520_s21 = scalar_lea.vmem [#allocation5], %s5962_s26 }
  0x98   : > { %s6014_s28 = scalar_lea.hbm %s7142_s1, %s7195_s14  ;;  %s528_s4 = sshll.u32 %s520_s21, 4  ;;  %s6018_s4 = int_to_ptr.vmem [resolvable:$true] %s528_s4 }
  0x99   : > { %s516_s13 = sand.u32 1, %s5710_s24   ;;  %s5602_s18 = scalar_lea.hbm %s6014_s28, 1024 }
  0x9a   : > { %s6020_s15 = scalar_lea.sflag [#allocation6], %s516_s13  ;;  %p5603_p0 = scmp.ne.s32.totalorder %s6014_s28, %s5602_s18 }
  0x9b   : > { %s5607_s9 = scalar_lea.hbm %s7142_s1, 2048  ;;  %p5608_p6 = scmp.lt.u32.totalorder %s6014_s28, %s7142_s1 }
  0x9c   : > { %p5605_p8 = pnand %p5603_p0, %p5574_p9  ;;  %p5609_p10 = scmp.lt.u32.totalorder %s5607_s9, %s5602_s18 }
  0x9d   : > { %p5611_p7 = scmp.lt.u32.totalorder %s5602_s18, %s6014_s28 }
  0x9e   : > { %p5606_p13 = pneg %p5605_p8  ;;  %p5610_p3 = por %p5609_p10, %p5608_p6 }
  0xa0   : > { %p5612_p12 = por %p5611_p7, %p5610_p3 }
  0xa2   : > { %p5613_p2 = pnand %p5612_p12, %p5606_p13 }
  0xa4   : > { %5616 = shalt.err (!%p5613_p2)
}
  0xa5   : > { %s5617_s13 = scalar_lea.vmem %s6018_s4, 1024  ;;  %s5720_s26 = smov [#allocation5]  }
  0xa6   : > { %p5618_p1 = scmp.ne.s32.totalorder %s6018_s4, %s5617_s13  ;;  %s5622_s7 = sshll.u32 %s5720_s26, 4  ;;  %s5623_s7 = int_to_ptr.vmem [resolvable:$false] %s5622_s7 }
  0xa7   : > { %s5624_s21 = scalar_lea.vmem %s5623_s7, 2048  ;;  %p5625_p8 = scmp.lt.s32.totalorder %s6018_s4, %s5623_s7 }
  0xa8   : > { %p5620_p4 = pnand %p5618_p1, %p5574_p9  ;;  %p5626_p6 = scmp.lt.s32.totalorder %s5624_s21, %s5617_s13 }
  0xaa   : > { %p5621_p0 = pneg %p5620_p4  ;;  %p5627_p10 = por %p5626_p6, %p5625_p8 }
  0xac   : > { %p5628_p3 = pnand %p5627_p10, %p5621_p0 }
  0xae   : > { %5631 = shalt.err (!%p5628_p3)
}
  0xaf   : > { %5269 = dma.hbm_to_vmem [thread:$0]  (!%p5972_p11), %s6014_s28, 1024, %s6018_s4, %s6020_s15, %s5718_s17, %s5718_s17, %s5719_s30  }
  0xb0   : > { %p7196_p9 = scmp.ne.s32.totalorder %s7185_s29, 0 }
  0xb1   : > { %s6052_s18 = sand.u32 (!%p7196_p9), 1, %s5702_s22   ;;  %p7197_p13 = scmp.ne.s32.totalorder (!%p7196_p9), %s7182_s27, 0 }
  0xb2   : > { %540 = sbr.rel (%p7196_p9) target bundleno = 2023 (0x7e7), region = 84  ;;  %s4662_s20 = sshll.u32 (!%p7196_p9), %s6052_s18, 6 }
  0xb3   : > { %s543_s19 = scalar_lea.sflag (!%p7196_p9), [#allocation3], %s6052_s18  ;;  %s6056_s9 = scalar_lea.vmem (!%p7196_p9), [#allocation2], %s4662_s20 }
  0xb9   : > { %5677 = dma.done.wait (%p7197_p13), %s543_s19, 1024  }
  0xba   : > { %5679 = vsyncadd (%p7197_p13), %s543_s19, 4294966272  ;;  %s551_s4 = sand.u32 1, %s5831_s25   ;;  %s6063_s29 = scalar_lea.vmem [#allocation5], %s4662_s20 }
  0xbb   : > { %s552_s15 = scalar_lea.sflag [#allocation6], %s551_s4 }
  0xbc   : > { %5681 = dma.done.wait (%p7197_p13), %s552_s15, 1024  }
  0xbd   : > { %5683 = vsyncadd (%p7197_p13), %s552_s15, 4294966272  ;;  %p7198_p11 = scmp.eq.s32.totalorder %s5831_s25, 0 }
  0xbf   : > { %5685 = dma.done.wait (%p7198_p11), [#allocation6], 4096   ;;  %p7199_p7 = pmov %p7198_p11 }
  0xc1   : > { %5687 = vsyncadd (%p7199_p7), [#allocation6], 4294963200  ;;  %p7200_p12 = pmov %p7199_p7 }
  0xc2   : > { %p7201_p2 = pmov %p7199_p7 }
  0xc3   : > { %5689 = dma.done.wait (%p7200_p12), [#allocation9], 32  }
  0xc4   : > { %5691 = vsyncadd (%p7201_p2), [#allocation9], 4294967264  ;;  %v6080_v0 = vld [vmem:[%s7143_s2 + $0x40] sm:$0xff]   ;;  %v6103_v4 = vld [vmem:[%s7143_s2 + $0x48] sm:$0xff]   ;;  %v5721_v24 = vmov 1983009808   ;;  %v719_v26 = vlaneseq }
  0xc5   : > { %v6085_v1 = vld [vmem:[%s7143_s2 + $0xc0] sm:$0xff]   ;;  %4869 = vmatprep.subr.bf16.mxu0 %v6080_v0  ;;  %v6109_v5 = vld [vmem:[%s7143_s2 + $0xc8] sm:$0xff]   ;;  %v6127_v8 = vld [vmem:[%s7143_s2 + $0x50] sm:$0xff]   ;;  %v717_v25 = vunpack.c.l.s4 %v5721_v24  ;;  %vm1407_vm0 = vcmask 1041408   ;;  %vm1396_vm1 = vcmask 1040384   ;;  %vm2222_vm4 = vcmask 1042432  }
  0xc6   : > { %v6091_v2 = vld [vmem:[%s7143_s2] sm:$0xff]   ;;  %4897 = vmatprep.subr.bf16.mxu1 %v6085_v1  ;;  %v6115_v6 = vld [vmem:[%s7143_s2 + $0x8] sm:$0xff]   ;;  %v6133_v9 = vld [vmem:[%s7143_s2 + $0xd0] sm:$0xff]   ;;  %v720_v32 = vshrl.u32 %v719_v26, 7  ;;  %vm1397_vm2 = vsmask.f32 256 }
  0xc7   : > { %v6097_v3 = vld [vmem:[%s7143_s2 + $0x80] sm:$0xff]   ;;  %4870 = vmatpush3.bf16.msra.mxu0 %v6091_v2  ;;  %v6121_v7 = vld [vmem:[%s7143_s2 + $0x88] sm:$0xff]   ;;  %v6139_v10 = vld [vmem:[%s7143_s2 + $0x10] sm:$0xff]   ;;  %v718_v31 = vunpack.c.0.s8 %v717_v25  ;;  %vm2223_vm5 = vsmask.f32 2304  ;;  %s7207_s14 = sld [smem:[#allocation23_spill]] }
  0xc8   : > { %4898 = vmatpush3.bf16.msra.mxu1 %v6097_v3  ;;  %4871 = vmatprep.subr.bf16.mxu0 %v6103_v4  ;;  %v6145_v11 = vld [vmem:[%s7143_s2 + $0x90] sm:$0xff]   ;;  %v6151_v12 = vld [vmem:[%s7143_s2 + $0x58] sm:$0xff]   ;;  %v6175_v16 = vld [vmem:[%s7143_s2 + $0x60] sm:$0xff]   ;;  %s7208_s21 = sld [smem:[#allocation22_spill]]  ;;  %vm3580_vm7 = vcmask 261120   ;;  %s7209_s4 = sld [smem:[#allocation25_spill]] }
  0xc9   : > { %4899 = vmatprep.subr.bf16.mxu1 %v6109_v5  ;;  %v6157_v13 = vld [vmem:[%s7143_s2 + $0xd8] sm:$0xff]   ;;  %v6181_v17 = vld [vmem:[%s7143_s2 + $0xe0] sm:$0xff]   ;;  %v6199_v20 = vld [vmem:[%s7143_s2 + $0x68] sm:$0xff]   ;;  %v6267_v37 = vsub.s32 %v718_v31, %v720_v32  ;;  %s7210_s30 = sld [smem:[#allocation24_spill]]  ;;  %s4667_s13 = sshll.u32 %s6052_s18, 5 }
  0xca   : > { %v6163_v14 = vld [vmem:[%s7143_s2 + $0x18] sm:$0xff]   ;;  %v6187_v18 = vld [vmem:[%s7143_s2 + $0x20] sm:$0xff]   ;;  %v6205_v21 = vld [vmem:[%s7143_s2 + $0xe8] sm:$0xff]   ;;  %s620_s26 = scalar_lea.vmem [#allocation11], %s4667_s13  ;;  %s7212_s19 = sld [smem:[#allocation29_spill]] }
  0xcb   : > { %4872 = vmatpush3.bf16.msra.mxu0 %v6115_v6  ;;  %v6169_v15 = vld [vmem:[%s7143_s2 + $0x98] sm:$0xff]   ;;  %v6193_v19 = vld [vmem:[%s7143_s2 + $0xa0] sm:$0xff]   ;;  %v6211_v22 = vld [vmem:[%s7143_s2 + $0x28] sm:$0xff]   ;;  %s4523_s7 = sshll.u32 %s620_s26, 4  ;;  %s4510_s0 = scalar_lea.sflag [#allocation4], %s6052_s18  ;;  %s7091_s7 = int_to_ptr.vmem [resolvable:$true] %s4523_s7 }
  0xcc   : > { %4900 = vmatpush3.bf16.msra.mxu1 %v6121_v7  ;;  %4873 = vmatprep.subr.bf16.mxu0 %v6127_v8  ;;  %v6217_v23 = vld [vmem:[%s7143_s2 + $0xa8] sm:$0xff]   ;;  %v6223_v27 = vld [vmem:[%s7143_s2 + $0x70] sm:$0xff]   ;;  %v6247_v33 = vld [vmem:[%s7143_s2 + $0x78] sm:$0xff]   ;;  %s5632_s17 = scalar_lea.vmem %s7091_s7, 512 }
  0xcd   : > { %4901 = vmatprep.subr.bf16.mxu1 %v6133_v9  ;;  %v6229_v28 = vld [vmem:[%s7143_s2 + $0xf0] sm:$0xff]   ;;  %v6253_v34 = vld [vmem:[%s7143_s2 + $0xf8] sm:$0xff]   ;;  %v5356_v38 = vld [vmem:[%s6056_s9] ss:$8 sps:$4 sm:$0xff]   ;;  %p5633_p1 = scmp.ne.s32.totalorder %s7091_s7, %s5632_s17 }
  0xce   : > { %v6235_v29 = vld [vmem:[%s7143_s2 + $0x30] sm:$0xff]   ;;  %v6259_v35 = vld [vmem:[%s7143_s2 + $0x38] sm:$0xff]   ;;  %v5360_v40 = vld [vmem:[%s6056_s9 + $0x4] ss:$8 sps:$4 sm:$0xff]   ;;  %v722_v42 = vrot.slane %v5356_v38, %v6267_v37 }
  0xcf   : > { %4874 = vmatpush3.bf16.msra.mxu0 %v6139_v10  ;;  %v6241_v30 = vld [vmem:[%s7143_s2 + $0xb0] sm:$0xff]   ;;  %v6265_v36 = vld [vmem:[%s7143_s2 + $0xb8] sm:$0xff]   ;;  %v729_v44 = vrot.slane %v5360_v40, %v6267_v37  ;;  %v5362_v46 = vld [vmem:[%s6056_s9 + $0x20] ss:$8 sps:$4 sm:$0xff]   ;;  %p5634_p4 = pnand %p5633_p1, %p5956_p5 }
  0xd0   : > { %4902 = vmatpush3.bf16.msra.mxu1 %v6145_v11  ;;  %4875 = vmatprep.subr.bf16.mxu0 %v6151_v12  ;;  %v5358_v39 = vld [vmem:[%s6056_s9 + $0x10] ss:$8 sps:$4 sm:$0xff]   ;;  %v5361_v41 = vld [vmem:[%s6056_s9 + $0x14] ss:$8 sps:$4 sm:$0xff]   ;;  %v5366_v48 = vld [vmem:[%s6056_s9 + $0x24] ss:$8 sps:$4 sm:$0xff]   ;;  %v758_v54 = vrot.slane %v5362_v46, %v6267_v37 }
  0xd1   : > { %4903 = vmatprep.subr.bf16.mxu1 %v6157_v13  ;;  %v736_v43 = vrot.slane %v5358_v39, %v6267_v37  ;;  %v743_v45 = vrot.slane %v5361_v41, %v6267_v37  ;;  %v5364_v47 = vld [vmem:[%s6056_s9 + $0x30] ss:$8 sps:$4 sm:$0xff]   ;;  %v5367_v51 = vld [vmem:[%s6056_s9 + $0x34] ss:$8 sps:$4 sm:$0xff]   ;;  %v5368_v56 = vld [vmem:[%s6063_s29] ss:$8 sps:$4 sm:$0xff]   ;;  %v765_v57 = vrot.slane %v5366_v48, %v6267_v37  ;;  %p5635_p0 = pneg %p5634_p4 }
  0xd2   : > { %v772_v55 = vrot.slane %v5364_v47, %v6267_v37  ;;  %v779_v58 = vrot.slane %v5367_v51, %v6267_v37  ;;  %v5370_v59 = vld [vmem:[%s6063_s29 + $0x10] ss:$8 sps:$4 sm:$0xff]   ;;  %v5372_v60 = vld [vmem:[%s6063_s29 + $0x4] ss:$8 sps:$4 sm:$0xff]   ;;  %v5373_v61 = vld [vmem:[%s6063_s29 + $0x14] ss:$8 sps:$4 sm:$0xff]  }
  0xd3   : > { %4876 = vmatpush3.bf16.msra.mxu0 %v6163_v14  ;;  %v745_v49 = vcombine.high %v722_v42, %v736_v43  ;;  %v744_v50 = vcombine.low %v722_v42, %v736_v43  ;;  %v747_v52 = vcombine.high %v729_v44, %v743_v45  ;;  %v746_v53 = vcombine.low %v729_v44, %v743_v45  ;;  %v5389_v31 = vld [vmem:[#allocation7 + $0x88] sm:$0xff]   ;;  %v5390_v32 = vld [vmem:[#allocation7 + $0x58] sm:$0xff]   ;;  %v5395_v38 = vld [vmem:[#allocation7 + $0x20] sm:$0xff]   ;;  %s7206_s9 = sld [smem:[#allocation21_spill]] }
  0xd4   : > { %4904 = vmatpush3.bf16.msra.mxu1 %v6169_v15  ;;  %4877 = vmatprep.subr.bf16.mxu0 %v6175_v16  ;;  %v781_v62 = vcombine.high %v758_v54, %v772_v55  ;;  %v783_v63 = vcombine.high %v765_v57, %v779_v58  ;;  %v780_v24 = vcombine.low %v758_v54, %v772_v55  ;;  %v5396_v39 = vld [vmem:[#allocation7 + $0xd8] sm:$0xff]   ;;  %v5398_v41 = vld [vmem:[#allocation7 + $0x68] sm:$0xff]   ;;  %v5400_v43 = vld [vmem:[#allocation7 + $0xe0] sm:$0xff]  }
  0xd5   : > { %4905 = vmatprep.subr.bf16.mxu1 %v6181_v17  ;;  %1016 = vmatprep.mubr.bf16.mxu0 %v745_v49  ;;  %v1135_v25 = vrot.slane %v5372_v60, %v6267_v37  ;;  %v1149_v26 = vrot.slane %v5373_v61, %v6267_v37  ;;  %v5397_v40 = vld [vmem:[#allocation7 + $0x98] sm:$0xff]   ;;  %v5399_v42 = vld [vmem:[#allocation7 + $0x28] sm:$0xff]   ;;  %v5401_v44 = vld [vmem:[#allocation7 + $0xa0] sm:$0xff]  }
  0xd6   : > { %1065 = vmatprep.mubr.bf16.mxu1 %v747_v52  ;;  %v5402_v45 = vld [vmem:[#allocation7 + $0x70] sm:$0xff]   ;;  %v5404_v47 = vld [vmem:[#allocation7 + $0xe8] sm:$0xff]   ;;  %v5406_v49 = vld [vmem:[#allocation7 + $0x78] sm:$0xff]  }
  0xd7   : > { %4878 = vmatpush3.bf16.msra.mxu0 %v6187_v18  ;;  %v5403_v46 = vld [vmem:[#allocation7 + $0x30] sm:$0xff]   ;;  %v5405_v48 = vld [vmem:[#allocation7 + $0xa8] sm:$0xff]   ;;  %v5411_v54 = vld [vmem:[#allocation7 + $0xb8] sm:$0xff]  }
  0xd8   : > { %4906 = vmatpush3.bf16.msra.mxu1 %v6193_v19  ;;  %4879 = vmatprep.subr.bf16.mxu0 %v6199_v20  ;;  %v5408_v51 = vld [vmem:[#allocation7 + $0xf0] sm:$0xff]   ;;  %vm6403_vm3 = vmand %vm1396_vm1, %vm1397_vm2 }
  0xd9   : > { %4907 = vmatprep.subr.bf16.mxu1 %v6205_v21  ;;  %v5409_v52 = vld [vmem:[#allocation7 + $0xb0] sm:$0xff]   ;;  %vm6543_vm6 = vmand %vm2222_vm4, %vm2223_vm5 }
  0xdb   : > { %4880 = vmatpush3.bf16.msra.mxu0 %v6211_v22 }
  0xdc   : > { %4908 = vmatpush3.bf16.msra.mxu1 %v6217_v23  ;;  %4881 = vmatprep.subr.bf16.mxu0 %v6223_v27 }
  0xdd   : > { %4909 = vmatprep.subr.bf16.mxu1 %v6229_v28 }
  0xdf   : > { %4882 = vmatpush3.bf16.msra.mxu0 %v6235_v29 }
  0xe0   : > { %4910 = vmatpush3.bf16.msra.mxu1 %v6241_v30  ;;  %4883 = vmatprep.subr.bf16.mxu0 %v6247_v33 }
  0xe1   : > { %4911 = vmatprep.subr.bf16.mxu1 %v6253_v34 }
  0xe3   : > { %4884 = vmatpush3.bf16.msra.mxu0 %v6259_v35 }
  0xe4   : > { %4912 = vmatpush3.bf16.msra.mxu1 %v6265_v36  ;;  %4925 = vmatprep.subr.bf16.mxu0 %v6080_v0  ;;  %v1128_v0 = vrot.slane %v5368_v56, %v6267_v37 }
  0xe5   : > { %4953 = vmatprep.subr.bf16.mxu1 %v6085_v1  ;;  %v1142_v1 = vrot.slane %v5370_v59, %v6267_v37 }
  0xe6   : > { %1017 = vmatmul.mubr.bf16.vlgmr.msra.gmra.mrb[0].mxu0 %v744_v50  ;;  %v5407_v50 = vld [vmem:[#allocation7 + $0x38] sm:$0xff]  }
  0xe7   : > { %1066 = vmatmul.mubr.bf16.vlgmr.msra.gmra.mrb[0].mxu1 %v746_v53  ;;  %4926 = vmatpush3.bf16.msra.mxu0 %v6091_v2  ;;  %v782_v2 = vcombine.low %v765_v57, %v779_v58  ;;  %v5410_v53 = vld [vmem:[#allocation7 + $0xf8] sm:$0xff]   ;;  %v6338_v57 = vld [vmem:[%s7144_s3] ss:$0 sm:$0xff] }
  0xe8   : > { %4954 = vmatpush3.bf16.msra.mxu1 %v6097_v3  ;;  %4927 = vmatprep.subr.bf16.mxu0 %v6103_v4  ;;  %v1151_v3 = vcombine.high %v1128_v0, %v1142_v1  ;;  %v1153_v4 = vcombine.high %v1135_v25, %v1149_v26 }
  0xe9   : > { %4955 = vmatprep.subr.bf16.mxu1 %v6109_v5  ;;  %1024 = vmatprep.mubr.bf16.mxu0 %v781_v62  ;;  %v5374_v5 = vld [vmem:[%s6063_s29 + $0x20] ss:$8 sps:$4 sm:$0xff]  }
  0xea   : > { %1073 = vmatprep.mubr.bf16.mxu1 %v783_v63 }
  0xeb   : > { %4928 = vmatpush3.bf16.msra.mxu0 %v6115_v6  ;;  %v5376_v6 = vld [vmem:[%s6063_s29 + $0x30] ss:$8 sps:$4 sm:$0xff]  }
  0xec   : > { %4956 = vmatpush3.bf16.msra.mxu1 %v6121_v7  ;;  %4929 = vmatprep.subr.bf16.mxu0 %v6127_v8  ;;  %v5378_v7 = vld [vmem:[%s6063_s29 + $0x24] ss:$8 sps:$4 sm:$0xff]   ;;  %v5379_v8 = vld [vmem:[%s6063_s29 + $0x34] ss:$8 sps:$4 sm:$0xff]   ;;  %s7211_s29 = sld [smem:[#allocation27_spill]] }
  0xed   : > { %4957 = vmatprep.subr.bf16.mxu1 %v6133_v9  ;;  %v1164_v9 = vrot.slane %v5374_v5, %v6267_v37 }
  0xee   : > { %1025 = vmatmul.mubr.bf16.gmra.mrb[4].mxu0 %v780_v24 }
  0xef   : > { %4930 = vmatpush3.bf16.msra.mxu0 %v6139_v10  ;;  %1074 = vmatmul.mubr.bf16.gmra.mrb[4].mxu1 %v782_v2  ;;  %v1178_v10 = vrot.slane %v5376_v6, %v6267_v37 }
  0xf0   : > { %4958 = vmatpush3.bf16.msra.mxu1 %v6145_v11  ;;  %4931 = vmatprep.subr.bf16.mxu0 %v6151_v12  ;;  %v1171_v11 = vrot.slane %v5378_v7, %v6267_v37  ;;  %v1185_v12 = vrot.slane %v5379_v8, %v6267_v37 }
  0xf1   : > { %4959 = vmatprep.subr.bf16.mxu1 %v6157_v13  ;;  %1230 = vmatprep.mubr.bf16.mxu0 %v1151_v3  ;;  %v1150_v13 = vcombine.low %v1128_v0, %v1142_v1 }
  0xf2   : > { %1279 = vmatprep.mubr.bf16.mxu1 %v1153_v4 }
  0xf3   : > { %4932 = vmatpush3.bf16.msra.mxu0 %v6163_v14  ;;  %v1152_v14 = vcombine.low %v1135_v25, %v1149_v26 }
  0xf4   : > { %4960 = vmatpush3.bf16.msra.mxu1 %v6169_v15  ;;  %4933 = vmatprep.subr.bf16.mxu0 %v6175_v16  ;;  %v1187_v15 = vcombine.high %v1164_v9, %v1178_v10  ;;  %v1189_v16 = vcombine.high %v1171_v11, %v1185_v12 }
  0xf5   : > { %4961 = vmatprep.subr.bf16.mxu1 %v6181_v17  ;;  %v1186_v17 = vcombine.low %v1164_v9, %v1178_v10 }
  0xf7   : > { %4934 = vmatpush3.bf16.msra.mxu0 %v6187_v18  ;;  %v1188_v18 = vcombine.low %v1171_v11, %v1185_v12 }
  0xf8   : > { %4962 = vmatpush3.bf16.msra.mxu1 %v6193_v19  ;;  %4935 = vmatprep.subr.bf16.mxu0 %v6199_v20  ;;  %v5380_v19 = vld [vmem:[#allocation7 + $0x40] sm:$0xff]  }
  0xf9   : > { %4963 = vmatprep.subr.bf16.mxu1 %v6205_v21  ;;  %v5381_v20 = vld [vmem:[#allocation7] sm:$0xff]   ;;  %v5382_v21 = vld [vmem:[#allocation7 + $0x48] sm:$0xff]  }
  0xfb   : > { %4936 = vmatpush3.bf16.msra.mxu0 %v6211_v22  ;;  %v5383_v22 = vld [vmem:[#allocation7 + $0x8] sm:$0xff]  }
  0xfc   : > { %4964 = vmatpush3.bf16.msra.mxu1 %v6217_v23  ;;  %4937 = vmatprep.subr.bf16.mxu0 %v6223_v27  ;;  %v5384_v23 = vld [vmem:[#allocation7 + $0xc0] sm:$0xff]  }
  0xfd   : > { %4965 = vmatprep.subr.bf16.mxu1 %v6229_v28  ;;  %v5385_v27 = vld [vmem:[#allocation7 + $0x80] sm:$0xff]   ;;  %v5386_v28 = vld [vmem:[#allocation7 + $0x50] sm:$0xff]  }
  0xff   : > { %4938 = vmatpush3.bf16.msra.mxu0 %v6235_v29  ;;  %v5387_v29 = vld [vmem:[#allocation7 + $0x10] sm:$0xff]  }
 0x100   : > { %4966 = vmatpush3.bf16.msra.mxu1 %v6241_v30  ;;  %4939 = vmatprep.subr.bf16.mxu0 %v6247_v33  ;;  %v5388_v30 = vld [vmem:[#allocation7 + $0xc8] sm:$0xff]   ;;  %v5391_v33 = vld [vmem:[#allocation7 + $0x18] sm:$0xff]  }
 0x101   : > { %4967 = vmatprep.subr.bf16.mxu1 %v6253_v34  ;;  %v5392_v34 = vld [vmem:[#allocation7 + $0xd0] sm:$0xff]  }
 0x103   : > { %4940 = vmatpush3.bf16.msra.mxu0 %v6259_v35  ;;  %v5393_v35 = vld [vmem:[#allocation7 + $0x90] sm:$0xff]  }
 0x104   : > { %4968 = vmatpush3.bf16.msra.mxu1 %v6265_v36  ;;  %4981 = vmatprep.subr.bf16.mxu0 %v5380_v19  ;;  %v5394_v36 = vld [vmem:[#allocation7 + $0x60] sm:$0xff]  }
 0x105   : > { %5009 = vmatprep.subr.bf16.mxu1 %v5384_v23 }
 0x106   : > { %1231 = vmatmul.mubr.bf16.vlgmr.msra.gmra.mrb[8].mxu0 %v1150_v13 }
 0x107   : > { %1280 = vmatmul.mubr.bf16.vlgmr.msra.gmra.mrb[8].mxu1 %v1152_v14  ;;  %1238 = vmatprep.mubr.bf16.mxu0 %v1187_v15 }
 0x108   : > { %1287 = vmatprep.mubr.bf16.mxu1 %v1189_v16  ;;  %4982 = vmatpush3.bf16.msra.mxu0 %v5381_v20 }
 0x109   : > { %4983 = vmatprep.subr.bf16.mxu0 %v5382_v21  ;;  %5010 = vmatpush3.bf16.msra.mxu1 %v5385_v27 }
 0x10a   : > { %5011 = vmatprep.subr.bf16.mxu1 %v5388_v30 }
 0x10c   : > { %4984 = vmatpush3.bf16.msra.mxu0 %v5383_v22 }
 0x10d   : > { %4985 = vmatprep.subr.bf16.mxu0 %v5386_v28  ;;  %5012 = vmatpush3.bf16.msra.mxu1 %v5389_v31 }
 0x10e   : > { %1239 = vmatmul.mubr.bf16.gmra.mrb[12].mxu0 %v1186_v17  ;;  %5013 = vmatprep.subr.bf16.mxu1 %v5392_v34 }
 0x10f   : > { %1288 = vmatmul.mubr.bf16.gmra.mrb[12].mxu1 %v1188_v18 }
 0x110   : > { %4986 = vmatpush3.bf16.msra.mxu0 %v5387_v29 }
 0x111   : > { %4987 = vmatprep.subr.bf16.mxu0 %v5390_v32  ;;  %5014 = vmatpush3.bf16.msra.mxu1 %v5393_v35 }
 0x112   : > { %5015 = vmatprep.subr.bf16.mxu1 %v5396_v39 }
 0x114   : > { %4988 = vmatpush3.bf16.msra.mxu0 %v5391_v33 }
 0x115   : > { %4989 = vmatprep.subr.bf16.mxu0 %v5394_v36  ;;  %5016 = vmatpush3.bf16.msra.mxu1 %v5397_v40 }
 0x116   : > { %5017 = vmatprep.subr.bf16.mxu1 %v5400_v43 }
 0x118   : > { %4990 = vmatpush3.bf16.msra.mxu0 %v5395_v38 }
 0x119   : > { %4991 = vmatprep.subr.bf16.mxu0 %v5398_v41  ;;  %5018 = vmatpush3.bf16.msra.mxu1 %v5401_v44 }
 0x11a   : > { %5019 = vmatprep.subr.bf16.mxu1 %v5404_v47 }
 0x11c   : > { %4992 = vmatpush3.bf16.msra.mxu0 %v5399_v42 }
 0x11d   : > { %4993 = vmatprep.subr.bf16.mxu0 %v5402_v45  ;;  %5020 = vmatpush3.bf16.msra.mxu1 %v5405_v48 }
 0x11e   : > { %5021 = vmatprep.subr.bf16.mxu1 %v5408_v51 }
 0x120   : > { %4994 = vmatpush3.bf16.msra.mxu0 %v5403_v46 }
 0x121   : > { %4995 = vmatprep.subr.bf16.mxu0 %v5406_v49  ;;  %5022 = vmatpush3.bf16.msra.mxu1 %v5409_v52 }
 0x122   : > { %5023 = vmatprep.subr.bf16.mxu1 %v5410_v53 }
 0x124   : > { %4996 = vmatpush3.bf16.msra.mxu0 %v5407_v50 }
 0x125   : > { %5024 = vmatpush3.bf16.msra.mxu1 %v5411_v54 }
 0x1b9   : > { %v4885_v55 = vpop.f32.mrb[0].mxu0 }
 0x1ba   : > { %v4913_v56 = vpop.f32.mrb[0].mxu1  ;;  %v4886_v58 = vpop.f32.mrb[1].mxu0 }
 0x1bb   : > { %v4887_v59 = vadd.f32 %v4886_v58, %v4885_v55  ;;  %v4914_v60 = vpop.f32.mrb[1].mxu1  ;;  %v4888_v61 = vpop.f32.mrb[2].mxu0 }
 0x1bc   : > { %v4915_v62 = vadd.f32 %v4914_v60, %v4913_v56  ;;  %v4916_v63 = vpop.f32.mrb[2].mxu1  ;;  %v4889_v0 = vpop.f32.mrb[3].mxu0 }
 0x1bd   : > { %v1019_v1 = vadd.f32 %v4887_v59, %v6338_v57  ;;  %v4890_v24 = vadd.f32 %v4889_v0, %v4888_v61  ;;  %v4917_v25 = vpop.f32.mrb[3].mxu1 }
 0x1be   : > { %v4918_v26 = vadd.f32 %v4917_v25, %v4916_v63 }
 0x1bf   : > { %v1068_v2 = vadd.f32 %v4915_v62, %v1019_v1  ;;  %v1022_v3 = vadd.f32 %v4890_v24, %v6338_v57 }
 0x1c1   : > { %v1071_v4 = vadd.f32 %v4918_v26, %v1022_v3  ;;  %v4891_v5 = vpop.f32.mrb[4].mxu0  ;;  %v1086_v18 = vcombine.high %v1068_v2, %v1068_v2  ;;  %v1094_v19 = vmax.f32 %v1068_v2, 0.0 }
 0x1c2   : > { %v4892_v6 = vpop.f32.mrb[5].mxu0  ;;  %v4919_v7 = vpop.f32.mrb[4].mxu1 }
 0x1c3   : > { %v4894_v8 = vpop.f32.mrb[6].mxu0  ;;  %v4920_v9 = vpop.f32.mrb[5].mxu1  ;;  %v4893_v10 = vadd.f32 %v4892_v6, %v4891_v5  ;;  %v1087_v22 = vcombine.high %v1071_v4, %v1071_v4  ;;  %v1095_v27 = vmax.f32 %v1086_v18, 0.0  ;;  %v1316_v28 = vpack.c.bf16 %v1094_v19, %v1094_v19 }
 0x1c4   : > { %v4895_v11 = vpop.f32.mrb[7].mxu0  ;;  %v4921_v12 = vadd.f32 %v4920_v9, %v4919_v7  ;;  %v4922_v13 = vpop.f32.mrb[6].mxu1  ;;  %v1096_v29 = vmax.f32 %v1071_v4, 0.0 }
 0x1c5   : > { %v4923_v14 = vpop.f32.mrb[7].mxu1  ;;  %v1027_v15 = vadd.f32 %v4893_v10, %v6338_v57  ;;  %v4896_v16 = vadd.f32 %v4895_v11, %v4894_v8  ;;  %v1097_v31 = vmax.f32 %v1087_v22, 0.0  ;;  %v1317_v33 = vpack.c.bf16 %v1095_v27, %v1095_v27 }
 0x1c6   : > { %v4924_v17 = vadd.f32 %v4923_v14, %v4922_v13  ;;  %v6345_v34 = vsel %vm1407_vm0, %v1316_v28, 0  ;;  %v1318_v35 = vpack.c.bf16 %v1096_v29, %v1096_v29 }
 0x1c7   : > { %v1030_v20 = vadd.f32 %v4896_v16, %v6338_v57  ;;  %v1076_v21 = vadd.f32 %v4921_v12, %v1027_v15  ;;  %v1319_v40 = vpack.c.bf16 %v1097_v31, %v1097_v31  ;;  %v6348_v42 = vsel %vm1407_vm0, %v1317_v33, 0 }
 0x1c8   : > { %v1483_v43 = vshll.u32 %v6345_v34, 16  ;;  %v6352_v44 = vsel %vm1407_vm0, %v1318_v35, 0  ;;  %v1489_v48 = vshll.u32 %v6348_v42, 16  ;;  %v1481_v56 = vshrl.u32 %v6345_v34, 16 }
 0x1c9   : > { %v1079_v23 = vadd.f32 %v4924_v17, %v1030_v20  ;;  %v1088_v30 = vcombine.high %v1076_v21, %v1076_v21  ;;  %v1098_v32 = vmax.f32 %v1076_v21, 0.0  ;;  %v6356_v49 = vsel %vm1407_vm0, %v1319_v40, 0 }
 0x1ca   : > { %v1485_v51 = vrot.slane %v1483_v43, 1  ;;  %v1495_v52 = vshll.u32 %v6352_v44, 16  ;;  %v1501_v58 = vshll.u32 %v6356_v49, 16  ;;  %v1487_v63 = vshrl.u32 %v6348_v42, 16 }
 0x1cb   : > { %v1099_v36 = vmax.f32 %v1088_v30, 0.0  ;;  %v1089_v38 = vcombine.high %v1079_v23, %v1079_v23  ;;  %v1100_v39 = vmax.f32 %v1079_v23, 0.0  ;;  %v1320_v41 = vpack.c.bf16 %v1098_v32, %v1098_v32 }
 0x1cc   : > { %v1491_v0 = vrot.slane %v1489_v48, 1  ;;  %v1493_v1 = vshrl.u32 %v6352_v44, 16  ;;  %v6373_v2 = vor.u32 %v1485_v51, %v1481_v56  ;;  %v1497_v3 = vrot.slane %v1495_v52, 1 }
 0x1cd   : > { %v1321_v45 = vpack.c.bf16 %v1099_v36, %v1099_v36  ;;  %v1101_v46 = vmax.f32 %v1089_v38, 0.0  ;;  %v1322_v47 = vpack.c.bf16 %v1100_v39, %v1100_v39  ;;  %v6359_v50 = vsel %vm1407_vm0, %v1320_v41, 0 }
 0x1ce   : > { %v1507_v59 = vshll.u32 %v6359_v50, 16  ;;  %v1503_v13 = vrot.slane %v1501_v58, 1  ;;  %v1505_v14 = vshrl.u32 %v6359_v50, 16  ;;  %v6382_v17 = vor.u32 %v1491_v0, %v1487_v63 }
 0x1cf   : > { %v6363_v53 = vsel %vm1407_vm0, %v1321_v45, 0  ;;  %v1323_v54 = vpack.c.bf16 %v1101_v46, %v1101_v46  ;;  %v6369_v60 = vsel %vm1407_vm0, %v1322_v47, 0  ;;  %v1499_v18 = vshrl.u32 %v6356_v49, 16 }
 0x1d0   : > { %v1513_v4 = vshll.u32 %v6363_v53, 16  ;;  %v1519_v9 = vshll.u32 %v6369_v60, 16  ;;  %v1509_v15 = vrot.slane %v1507_v59, 1  ;;  %v1511_v21 = vshrl.u32 %v6363_v53, 16 }
 0x1d1   : > { %v6377_v8 = vsel %vm1407_vm0, %v1323_v54, 0  ;;  %v1517_v23 = vshrl.u32 %v6369_v60, 16  ;;  %v6389_v33 = vor.u32 %v1497_v3, %v1493_v1  ;;  %v6391_v35 = vor.u32 %v1503_v13, %v1499_v18 }
 0x1d2   : > { %v1515_v22 = vrot.slane %v1513_v4, 1  ;;  %v1525_v27 = vshll.u32 %v6377_v8, 16  ;;  %v1521_v28 = vrot.slane %v1519_v9, 1  ;;  %v6393_v36 = vor.u32 %v1509_v15, %v1505_v14 }
 0x1d3   : > { %v1523_v38 = vshrl.u32 %v6377_v8, 16 }
 0x1d4   : > { %v6396_v51 = vor.u32 %v1515_v22, %v1511_v21  ;;  %v1527_v52 = vrot.slane %v1525_v27, 1  ;;  %v6398_v59 = vor.u32 %v1521_v28, %v1517_v23 }
 0x1d9   : > { %v4941_v55 = vpop.f32.mrb[8].mxu0 }
 0x1da   : > { %v4969_v61 = vpop.f32.mrb[8].mxu1  ;;  %v4942_v62 = vpop.f32.mrb[9].mxu0 }
 0x1db   : > { %v4943_v24 = vadd.f32 %v4942_v62, %v4941_v55  ;;  %v4970_v25 = vpop.f32.mrb[9].mxu1  ;;  %v4944_v26 = vpop.f32.mrb[10].mxu0 }
 0x1dc   : > { %v4971_v5 = vadd.f32 %v4970_v25, %v4969_v61  ;;  %v4972_v6 = vpop.f32.mrb[10].mxu1  ;;  %v4945_v7 = vpop.f32.mrb[11].mxu0 }
 0x1dd   : > { %v1233_v10 = vadd.f32 %v4943_v24, %v6338_v57  ;;  %v4946_v11 = vadd.f32 %v4945_v7, %v4944_v26  ;;  %v4973_v12 = vpop.f32.mrb[11].mxu1 }
 0x1de   : > { %v4974_v16 = vadd.f32 %v4973_v12, %v4972_v6 }
 0x1df   : > { %v1282_v19 = vadd.f32 %v4971_v5, %v1233_v10  ;;  %v1236_v20 = vadd.f32 %v4946_v11, %v6338_v57 }
 0x1e1   : > { %v1300_v29 = vcombine.high %v1282_v19, %v1282_v19  ;;  %v1308_v30 = vmax.f32 %v1282_v19, 0.0  ;;  %v1285_v31 = vadd.f32 %v4974_v16, %v1236_v20  ;;  %v4947_v32 = vpop.f32.mrb[12].mxu0 }
 0x1e2   : > { %v4975_v39 = vpop.f32.mrb[12].mxu1  ;;  %v4948_v40 = vpop.f32.mrb[13].mxu0 }
 0x1e3   : > { %v1309_v41 = vmax.f32 %v1300_v29, 0.0  ;;  %v1324_v43 = vpack.c.bf16 %v1308_v30, %v1308_v30  ;;  %v1301_v45 = vcombine.high %v1285_v31, %v1285_v31  ;;  %v1310_v46 = vmax.f32 %v1285_v31, 0.0  ;;  %v4976_v47 = vpop.f32.mrb[13].mxu1  ;;  %v4950_v48 = vpop.f32.mrb[14].mxu0 }
 0x1e4   : > { %v4949_v54 = vadd.f32 %v4948_v40, %v4947_v32  ;;  %v4977_v55 = vadd.f32 %v4976_v47, %v4975_v39  ;;  %v4978_v56 = vpop.f32.mrb[14].mxu1  ;;  %v4951_v58 = vpop.f32.mrb[15].mxu0  ;;  %v6410_v29 = vor.u32 %v1527_v52, %v1523_v38 }
 0x1e5   : > { %v1325_v61 = vpack.c.bf16 %v1309_v41, %v1309_v41  ;;  %v1333_v62 = vshrl.u32 %v1324_v43, 16  ;;  %v1311_v63 = vmax.f32 %v1301_v45, 0.0  ;;  %v4979_v0 = vpop.f32.mrb[15].mxu1  ;;  %v1326_v1 = vpack.c.bf16 %v1310_v46, %v1310_v46 }
 0x1e6   : > { %v1241_v24 = vadd.f32 %v4949_v54, %v6338_v57  ;;  %v4952_v25 = vadd.f32 %v4951_v58, %v4950_v48  ;;  %v4980_v26 = vadd.f32 %v4979_v0, %v4978_v56  ;;  %v1336_v4 = vshll.u32 %v1324_v43, 16 }
 0x1e7   : > { %v1335_v3 = vrot.slane %v1333_v62, 7  ;;  %v1340_v5 = vshrl.u32 %v1325_v61, 16  ;;  %v1327_v6 = vpack.c.bf16 %v1311_v63, %v1311_v63  ;;  %v1343_v7 = vshll.u32 %v1325_v61, 16 }
 0x1e8   : > { %v1347_v10 = vshrl.u32 %v1326_v1, 16  ;;  %v1290_v11 = vadd.f32 %v4977_v55, %v1241_v24  ;;  %v1244_v12 = vadd.f32 %v4952_v25, %v6338_v57  ;;  %v1350_v15 = vshll.u32 %v1326_v1, 16 }
 0x1e9   : > { %v1338_v13 = vor.u32 %v1336_v4, %v1335_v3  ;;  %v1342_v14 = vrot.slane %v1340_v5, 7  ;;  %v1354_v16 = vshrl.u32 %v1327_v6, 16  ;;  %v1357_v28 = vshll.u32 %v1327_v6, 16 }
 0x1ea   : > { %v1349_v18 = vrot.slane %v1347_v10, 7  ;;  %v1302_v19 = vcombine.high %v1290_v11, %v1290_v11  ;;  %v1312_v20 = vmax.f32 %v1290_v11, 0.0  ;;  %v1293_v21 = vadd.f32 %v4980_v26, %v1244_v12 }
 0x1eb   : > { %v1345_v22 = vor.u32 %v1343_v7, %v1342_v14  ;;  %v1399_v23 = vsel %vm6403_vm3, 0, %v1338_v13  ;;  %v1356_v27 = vrot.slane %v1354_v16, 7 }
 0x1ec   : > { %v1428_v30 = vshll.u32 %v1399_v23, 16  ;;  %v1352_v31 = vor.u32 %v1350_v15, %v1349_v18  ;;  %v1313_v32 = vmax.f32 %v1302_v19, 0.0  ;;  %v1426_v39 = vshrl.u32 %v1399_v23, 16 }
 0x1ed   : > { %v1400_v57 = vsel %vm6403_vm3, 0, %v1345_v22  ;;  %v1359_v40 = vor.u32 %v1357_v28, %v1356_v27  ;;  %v1328_v41 = vpack.c.bf16 %v1312_v20, %v1312_v20  ;;  %v1303_v47 = vcombine.high %v1293_v21, %v1293_v21 }
 0x1ee   : > { %v1430_v43 = vrot.slane %v1428_v30, 1  ;;  %v1435_v45 = vshll.u32 %v1400_v57, 16  ;;  %v1401_v46 = vsel %vm6403_vm3, 0, %v1352_v31  ;;  %v1433_v48 = vshrl.u32 %v1400_v57, 16 }
 0x1ef   : > { %v1402_v38 = vsel %vm6403_vm3, 0, %v1359_v40  ;;  %v1442_v52 = vshll.u32 %v1401_v46, 16  ;;  %v1329_v54 = vpack.c.bf16 %v1313_v32, %v1313_v32  ;;  %v1440_v56 = vshrl.u32 %v1401_v46, 16 }
 0x1f0   : > { %v1437_v55 = vrot.slane %v1435_v45, 1  ;;  %v1447_v58 = vshrl.u32 %v1402_v38, 16  ;;  %v1361_v61 = vshrl.u32 %v1328_v41, 16  ;;  %v1449_v63 = vshll.u32 %v1402_v38, 16 }
 0x1f1   : > { %v1444_v62 = vrot.slane %v1442_v52, 1  ;;  %v1364_v0 = vshll.u32 %v1328_v41, 16  ;;  %v1368_v1 = vshrl.u32 %v1329_v54, 16  ;;  %v1371_v25 = vshll.u32 %v1329_v54, 16 }
 0x1f2   : > { %v1363_v24 = vrot.slane %v1361_v61, 7  ;;  %v1314_v26 = vmax.f32 %v1293_v21, 0.0  ;;  %v1315_v3 = vmax.f32 %v1303_v47, 0.0  ;;  %v1545_v5 = vcombine.low %v1399_v23, %v6345_v34 }
 0x1f3   : > { %v1370_v4 = vrot.slane %v1368_v1, 7  ;;  %v1562_v6 = vcombine.low %v1400_v57, %v6348_v42  ;;  %v1579_v7 = vcombine.low %v1401_v46, %v6352_v44  ;;  %v1596_v13 = vcombine.low %v1402_v38, %v6356_v49 }
 0x1f4   : > { %v1366_v10 = vor.u32 %v1364_v0, %v1363_v24  ;;  %v1330_v11 = vpack.c.bf16 %v1314_v26, %v1314_v26  ;;  %v1331_v12 = vpack.c.bf16 %v1315_v3, %v1315_v3  ;;  %v1451_v14 = vrot.slane %v1449_v63, 1 }
 0x1f5   : > { %v1373_v15 = vor.u32 %v1371_v25, %v1370_v4  ;;  %v1553_v16 = vrot.slane %v1545_v5, %v6267_v37  ;;  %v1570_v18 = vrot.slane %v1562_v6, %v6267_v37  ;;  %v1587_v42 = vrot.slane %v1579_v7, %v6267_v37 }
 0x1f6   : > { %v1403_v19 = vsel %vm6403_vm3, 0, %v1366_v10  ;;  %v1375_v20 = vshrl.u32 %v1330_v11, 16  ;;  %v1382_v34 = vshrl.u32 %v1331_v12, 16  ;;  %v1378_v23 = vshll.u32 %v1330_v11, 16 }
 0x1f7   : > { %v1404_v44 = vsel %vm6403_vm3, 0, %v1373_v15  ;;  %v1454_v21 = vshrl.u32 %v1403_v19, 16  ;;  %v1456_v22 = vshll.u32 %v1403_v19, 16  ;;  %v1385_v30 = vshll.u32 %v1331_v12, 16 }
 0x1f8   : > { %v1463_v49 = vshll.u32 %v1404_v44, 16  ;;  %v1377_v27 = vrot.slane %v1375_v20, 7  ;;  %v1384_v28 = vrot.slane %v1382_v34, 7  ;;  %v1461_v31 = vshrl.u32 %v1404_v44, 16 }
 0x1f9   : > { %v1604_v32 = vrot.slane %v1596_v13, %v6267_v37  ;;  %v4702_v57 = vcombine.low %v1553_v16, %v1570_v18  ;;  %v1431_v40 = vor.u32 %v1430_v43, %v1426_v39  ;;  %v1458_v41 = vrot.slane %v1456_v22, 1 }
 0x1fa   : > { %v1380_v45 = vor.u32 %v1378_v23, %v1377_v27  ;;  %v1387_v46 = vor.u32 %v1385_v30, %v1384_v28  ;;  %v1438_v47 = vor.u32 %v1437_v55, %v1433_v48  ;;  %v1465_v38 = vrot.slane %v1463_v49, 1 }
 0x1fb   : > { %v4704_v52 = vcombine.low %v1587_v42, %v1604_v32  ;;  %v1445_v54 = vor.u32 %v1444_v62, %v1440_v56  ;;  %v1452_v61 = vor.u32 %v1451_v14, %v1447_v58  ;;  %v1546_v1 = vcombine.low %v1431_v40, %v6373_v2 }
 0x1fc   : > { %v1405_v63 = vsel %vm6403_vm3, 0, %v1380_v45  ;;  %v1406_v0 = vsel %vm6403_vm3, 0, %v1387_v46  ;;  %v1563_v24 = vcombine.low %v1438_v47, %v6382_v17  ;;  %v1762_v26 = vrot.slane %v4702_v57, %v6267_v37 }
 0x1fd   : > { %v1468_v25 = vshrl.u32 %v1405_v63, 16  ;;  %v1470_v39 = vshll.u32 %v1405_v63, 16  ;;  %v1477_v43 = vshll.u32 %v1406_v0, 16  ;;  %v1776_v48 = vrot.slane %v4704_v52, %v6267_v37  ;;  %v5413_v52 = vld [vmem:[%s7147_s6] sm:$0xff]  }
 0x1fe   : > { %v1560_v55 = vrot.slane %v1546_v1, %v6267_v37  ;;  %v1577_v56 = vrot.slane %v1563_v24, %v6267_v37  ;;  %v1580_v58 = vcombine.low %v1445_v54, %v6389_v33  ;;  %v1475_v3 = vshrl.u32 %v1406_v0, 16  ;;  %v5414_v54 = vld [vmem:[%s7147_s6 + $0x80] sm:$0xff]   ;;  %v5418_v1 = vld [vmem:[%s7147_s6 + $0x50] sm:$0xff]  }
 0x1ff   : > { %v1472_v62 = vrot.slane %v1470_v39, 1  ;;  %v1597_v4 = vcombine.low %v1452_v61, %v6391_v35  ;;  %v1613_v2 = vcombine.low %v1403_v19, %v6359_v50  ;;  %v1479_v17 = vrot.slane %v1477_v43, 1  ;;  %5159 = vmatprep.subr.bf16.mxu1 %v5414_v54  ;;  %v5415_v61 = vld [vmem:[%s7147_s6 + $0x48] sm:$0xff]   ;;  %v5419_v24 = vld [vmem:[%s7147_s6 + $0x10] sm:$0xff]   ;;  %v5421_v39 = vld [vmem:[%s7147_s6 + $0x58] sm:$0xff]  }
 0x200   : > { %v1784_v5 = vcombine.low %v1762_v26, %v1776_v48  ;;  %v1785_v6 = vcombine.high %v1762_v26, %v1776_v48  ;;  %v4703_v7 = vcombine.low %v1560_v55, %v1577_v56  ;;  %v1594_v10 = vrot.slane %v1580_v58, %v6267_v37  ;;  %v5422_v43 = vld [vmem:[%s7147_s6 + $0x18] sm:$0xff]   ;;  %v5424_v48 = vld [vmem:[%s7147_s6 + $0x60] sm:$0xff]   ;;  %v5427_v58 = vld [vmem:[%s7147_s6 + $0x68] sm:$0xff]  }
 0x201   : > { %v1611_v11 = vrot.slane %v1597_v4, %v6267_v37  ;;  %v1630_v12 = vcombine.low %v1404_v44, %v6363_v53  ;;  %v1647_v13 = vcombine.low %v1405_v63, %v6369_v60  ;;  %v1621_v33 = vrot.slane %v1613_v2, %v6267_v37  ;;  %v5416_v63 = vld [vmem:[%s7147_s6 + $0x8] sm:$0xff]   ;;  %v5423_v26 = vld [vmem:[%s7147_s6 + $0x98] sm:$0xff]   ;;  %v5425_v55 = vld [vmem:[%s7147_s6 + $0x20] sm:$0xff]  }
 0x202   : > { %2056 = vmatprep.mubr.bf16.mxu0 %v1785_v6  ;;  %v1664_v14 = vcombine.low %v1406_v0, %v6377_v8  ;;  %v1459_v35 = vor.u32 %v1458_v41, %v1454_v21  ;;  %v1466_v15 = vor.u32 %v1465_v38, %v1461_v31  ;;  %v1473_v19 = vor.u32 %v1472_v62, %v1468_v25  ;;  %v5412_v38 = vld [vmem:[%s7147_s6 + $0x40] sm:$0xff]   ;;  %v5417_v0 = vld [vmem:[%s7147_s6 + $0x88] sm:$0xff]   ;;  %v5420_v25 = vld [vmem:[%s7147_s6 + $0x90] sm:$0xff]  }
 0x203   : > { %2057 = vmatmul.mubr.bf16.vlgmr.msra.gmra.mrb[16].mxu0 %v1784_v5  ;;  %v4705_v50 = vcombine.low %v1594_v10, %v1611_v11  ;;  %v1638_v16 = vrot.slane %v1630_v12, %v6267_v37  ;;  %v1655_v18 = vrot.slane %v1647_v13, %v6267_v37  ;;  %v1480_v34 = vor.u32 %v1479_v17, %v1475_v3  ;;  %v5426_v56 = vld [vmem:[%s7147_s6 + $0xa0] sm:$0xff]   ;;  %v5428_v62 = vld [vmem:[%s7147_s6 + $0x28] sm:$0xff]   ;;  %v5430_v4 = vld [vmem:[%s7147_s6 + $0x70] sm:$0xff]  }
 0x204   : > { %v1672_v20 = vrot.slane %v1664_v14, %v6267_v37  ;;  %v1614_v53 = vcombine.low %v1459_v35, %v6393_v36  ;;  %v1631_v60 = vcombine.low %v1466_v15, %v6396_v51  ;;  %v1769_v42 = vrot.slane %v4703_v7, %v6267_v37  ;;  %5037 = vmatprep.subr.bf16.mxu0 %v5412_v38  ;;  %v5429_v3 = vld [vmem:[%s7147_s6 + $0xa8] sm:$0xff]   ;;  %v5431_v2 = vld [vmem:[%s7147_s6 + $0x30] sm:$0xff]   ;;  %v5433_v5 = vld [vmem:[%s7147_s6 + $0x78] sm:$0xff]  }
 0x205   : > { %v1783_v8 = vrot.slane %v4705_v50, %v6267_v37  ;;  %v4706_v44 = vcombine.low %v1621_v33, %v1638_v16  ;;  %v1648_v21 = vcombine.low %v1473_v19, %v6398_v59  ;;  %v1665_v27 = vcombine.low %v1480_v34, %v6410_v29  ;;  %5038 = vmatpush3.bf16.msra.mxu0 %v5413_v52  ;;  %v5432_v17 = vld [vmem:[%s7147_s6 + $0xb0] sm:$0xff]   ;;  %v5434_v6 = vld [vmem:[%s7147_s6 + $0x38] sm:$0xff]   ;;  %v4701_v35 = vld [vmem:[%s7146_s5] ss:$0 sm:$0xff] }
 0x206   : > { %v4708_v22 = vcombine.low %v1655_v18, %v1672_v20  ;;  %v1628_v23 = vrot.slane %v1614_v53, %v6267_v37  ;;  %v1645_v49 = vrot.slane %v1631_v60, %v6267_v37  ;;  %5039 = vmatprep.subr.bf16.mxu0 %v5415_v61  ;;  %v5435_v7 = vld [vmem:[%s7147_s6 + $0xb8] sm:$0xff]  }
 0x207   : > { %v1786_v28 = vcombine.low %v1769_v42, %v1783_v8  ;;  %v1787_v30 = vcombine.high %v1769_v42, %v1783_v8  ;;  %v1798_v36 = vrot.slane %v4706_v44, %v6267_v37  ;;  %v1662_v31 = vrot.slane %v1648_v21, %v6267_v37 }
 0x208   : > { %v1812_v51 = vrot.slane %v4708_v22, %v6267_v37  ;;  %v1679_v32 = vrot.slane %v1665_v27, %v6267_v37  ;;  %v4707_v57 = vcombine.low %v1628_v23, %v1645_v49 }
 0x209   : > { %2105 = vmatprep.mubr.bf16.mxu1 %v1787_v30  ;;  %5040 = vmatpush3.bf16.msra.mxu0 %v5416_v63 }
 0x20a   : > { %2106 = vmatmul.mubr.bf16.vlgmr.msra.gmra.mrb[16].mxu1 %v1786_v28  ;;  %v1821_v59 = vcombine.high %v1798_v36, %v1812_v51  ;;  %v1820_v40 = vcombine.low %v1798_v36, %v1812_v51  ;;  %v4709_v41 = vcombine.low %v1662_v31, %v1679_v32  ;;  %v1805_v45 = vrot.slane %v4707_v57, %v6267_v37 }
 0x20b   : > { %5160 = vmatpush3.bf16.msra.mxu1 %v5414_v54  ;;  %5041 = vmatprep.subr.bf16.mxu0 %v5418_v1 }
 0x20c   : > { %2064 = vmatprep.mubr.bf16.mxu0 %v1821_v59  ;;  %v1819_v29 = vrot.slane %v4709_v41, %v6267_v37  ;;  %5161 = vmatprep.subr.bf16.mxu1 %v5417_v0 }
 0x20d   : > { %2065 = vmatmul.mubr.bf16.gmra.mrb[20].mxu0 %v1820_v40 }
 0x20e   : > { %v1823_v46 = vcombine.high %v1805_v45, %v1819_v29  ;;  %v1822_v47 = vcombine.low %v1805_v45, %v1819_v29  ;;  %5042 = vmatpush3.bf16.msra.mxu0 %v5419_v24 }
 0x20f   : > { %5162 = vmatpush3.bf16.msra.mxu1 %v5417_v0  ;;  %5043 = vmatprep.subr.bf16.mxu0 %v5421_v39 }
 0x210   : > { %2113 = vmatprep.mubr.bf16.mxu1 %v1823_v46  ;;  %5163 = vmatprep.subr.bf16.mxu1 %v5420_v25 }
 0x212   : > { %2114 = vmatmul.mubr.bf16.gmra.mrb[20].mxu1 %v1822_v47  ;;  %5044 = vmatpush3.bf16.msra.mxu0 %v5422_v43 }
 0x213   : > { %5164 = vmatpush3.bf16.msra.mxu1 %v5420_v25  ;;  %5045 = vmatprep.subr.bf16.mxu0 %v5424_v48 }
 0x214   : > { %5165 = vmatprep.subr.bf16.mxu1 %v5423_v26 }
 0x216   : > { %5046 = vmatpush3.bf16.msra.mxu0 %v5425_v55 }
 0x217   : > { %5166 = vmatpush3.bf16.msra.mxu1 %v5423_v26  ;;  %5047 = vmatprep.subr.bf16.mxu0 %v5427_v58 }
 0x218   : > { %5167 = vmatprep.subr.bf16.mxu1 %v5426_v56 }
 0x21a   : > { %5048 = vmatpush3.bf16.msra.mxu0 %v5428_v62 }
 0x21b   : > { %5168 = vmatpush3.bf16.msra.mxu1 %v5426_v56  ;;  %5049 = vmatprep.subr.bf16.mxu0 %v5430_v4 }
 0x21c   : > { %5169 = vmatprep.subr.bf16.mxu1 %v5429_v3 }
 0x21e   : > { %5050 = vmatpush3.bf16.msra.mxu0 %v5431_v2 }
 0x21f   : > { %5170 = vmatpush3.bf16.msra.mxu1 %v5429_v3  ;;  %5051 = vmatprep.subr.bf16.mxu0 %v5433_v5 }
 0x220   : > { %5171 = vmatprep.subr.bf16.mxu1 %v5432_v17 }
 0x222   : > { %5052 = vmatpush3.bf16.msra.mxu0 %v5434_v6 }
 0x223   : > { %5172 = vmatpush3.bf16.msra.mxu1 %v5432_v17 }
 0x224   : > { %5173 = vmatprep.subr.bf16.mxu1 %v5435_v7 }
 0x227   : > { %5174 = vmatpush3.bf16.msra.mxu1 %v5435_v7 }
 0x2d6   : > { %v4997_v10 = vpop.f32.mrb[16].mxu0 }
 0x2d7   : > { %v4998_v11 = vpop.f32.mrb[17].mxu0 }
 0x2d8   : > { %v4999_v12 = vadd.f32 %v4998_v11, %v4997_v10  ;;  %v5000_v13 = vpop.f32.mrb[18].mxu0 }
 0x2d9   : > { %v5001_v33 = vpop.f32.mrb[19].mxu0 }
 0x2da   : > { %v5002_v14 = vadd.f32 %v5001_v33, %v5000_v13  ;;  %v2059_v16 = vadd.f32 %v4999_v12, %v4701_v35 }
 0x2dc   : > { %v2062_v53 = vadd.f32 %v5002_v14, %v4701_v35 }
 0x2dd   : > { %v5025_v15 = vpop.f32.mrb[16].mxu1 }
 0x2de   : > { %v5026_v50 = vpop.f32.mrb[17].mxu1 }
 0x2df   : > { %v5027_v18 = vadd.f32 %v5026_v50, %v5025_v15  ;;  %v5028_v19 = vpop.f32.mrb[18].mxu1 }
 0x2e0   : > { %v5003_v20 = vpop.f32.mrb[20].mxu0  ;;  %v5029_v34 = vpop.f32.mrb[19].mxu1 }
 0x2e1   : > { %v2108_v60 = vadd.f32 %v5027_v18, %v2059_v16  ;;  %v5004_v42 = vpop.f32.mrb[21].mxu0  ;;  %v5030_v8 = vadd.f32 %v5029_v34, %v5028_v19 }
 0x2e2   : > { %v5005_v44 = vadd.f32 %v5004_v42, %v5003_v20  ;;  %v5006_v21 = vpop.f32.mrb[22].mxu0 }
 0x2e3   : > { %v2126_v22 = vcombine.high %v2108_v60, %v2108_v60  ;;  %v2134_v23 = vmax.f32 %v2108_v60, 0.0  ;;  %v2111_v49 = vadd.f32 %v5030_v8, %v2062_v53  ;;  %v5007_v27 = vpop.f32.mrb[23].mxu0 }
 0x2e4   : > { %v5008_v28 = vadd.f32 %v5007_v27, %v5006_v21  ;;  %v2067_v29 = vadd.f32 %v5005_v44, %v4701_v35 }
 0x2e5   : > { %v2135_v30 = vmax.f32 %v2126_v22, 0.0  ;;  %v2142_v36 = vpack.c.bf16 %v2134_v23, %v2134_v23  ;;  %v2127_v51 = vcombine.high %v2111_v49, %v2111_v49  ;;  %v2136_v31 = vmax.f32 %v2111_v49, 0.0  ;;  %v5031_v32 = vpop.f32.mrb[20].mxu1 }
 0x2e6   : > { %v5032_v57 = vpop.f32.mrb[21].mxu1  ;;  %v2070_v47 = vadd.f32 %v5008_v28, %v4701_v35 }
 0x2e7   : > { %v2143_v59 = vpack.c.bf16 %v2135_v30, %v2135_v30  ;;  %v2151_v40 = vshrl.u32 %v2142_v36, 16  ;;  %v2137_v41 = vmax.f32 %v2127_v51, 0.0  ;;  %v5034_v45 = vpop.f32.mrb[22].mxu1  ;;  %v2144_v46 = vpack.c.bf16 %v2136_v31, %v2136_v31 }
 0x2e8   : > { %v5033_v38 = vadd.f32 %v5032_v57, %v5031_v32  ;;  %v5035_v52 = vpop.f32.mrb[23].mxu1  ;;  %v2154_v61 = vshll.u32 %v2142_v36, 16 }
 0x2e9   : > { %v2153_v54 = vrot.slane %v2151_v40, 7  ;;  %v2158_v63 = vshrl.u32 %v2143_v59, 16  ;;  %v2145_v0 = vpack.c.bf16 %v2137_v41, %v2137_v41  ;;  %v2161_v1 = vshll.u32 %v2143_v59, 16 }
 0x2ea   : > { %v2165_v24 = vshrl.u32 %v2144_v46, 16  ;;  %v2116_v25 = vadd.f32 %v5033_v38, %v2067_v29  ;;  %v5036_v39 = vadd.f32 %v5035_v52, %v5034_v45  ;;  %v2168_v55 = vshll.u32 %v2144_v46, 16 }
 0x2eb   : > { %v2156_v43 = vor.u32 %v2154_v61, %v2153_v54  ;;  %v2160_v26 = vrot.slane %v2158_v63, 7  ;;  %v2172_v56 = vshrl.u32 %v2145_v0, 16  ;;  %v2175_v6 = vshll.u32 %v2145_v0, 16 }
 0x2ec   : > { %v2167_v58 = vrot.slane %v2165_v24, 7  ;;  %v2128_v62 = vcombine.high %v2116_v25, %v2116_v25  ;;  %v2138_v3 = vmax.f32 %v2116_v25, 0.0  ;;  %v2119_v4 = vadd.f32 %v5036_v39, %v2070_v47 }
 0x2ed   : > { %v2163_v2 = vor.u32 %v2161_v1, %v2160_v26  ;;  %v2214_v17 = vsel %vm6403_vm3, 0, %v2156_v43  ;;  %v2174_v5 = vrot.slane %v2172_v56, 7 }
 0x2ee   : > { %v6551_v7 = vsel %vm6543_vm6, %v2214_v17, 0  ;;  %v2170_v10 = vor.u32 %v2168_v55, %v2167_v58  ;;  %v2139_v11 = vmax.f32 %v2128_v62, 0.0  ;;  %v2146_v12 = vpack.c.bf16 %v2138_v3, %v2138_v3 }
 0x2ef   : > { %v2215_v13 = vsel %vm6403_vm3, 0, %v2163_v2  ;;  %v2177_v33 = vor.u32 %v2175_v6, %v2174_v5  ;;  %v2129_v14 = vcombine.high %v2119_v4, %v2119_v4  ;;  %v2236_v35 = vshll.u32 %v6551_v7, 16 }
 0x2f0   : > { %v2216_v15 = vsel %vm6403_vm3, 0, %v2170_v10  ;;  %v2147_v50 = vpack.c.bf16 %v2139_v11, %v2139_v11  ;;  %v2179_v16 = vshrl.u32 %v2146_v12, 16  ;;  %v6560_v18 = vsel %vm6543_vm6, %v2215_v13, 0 }
 0x2f1   : > { %v2217_v19 = vsel %vm6403_vm3, 0, %v2177_v33  ;;  %v6566_v20 = vsel %vm6543_vm6, %v2216_v15, 0  ;;  %v2140_v34 = vmax.f32 %v2119_v4, 0.0  ;;  %v2182_v42 = vshll.u32 %v2146_v12, 16 }
 0x2f2   : > { %v6570_v53 = vsel %vm6543_vm6, %v2217_v19, 0  ;;  %v2181_v60 = vrot.slane %v2179_v16, 7  ;;  %v2186_v8 = vshrl.u32 %v2147_v50, 16  ;;  %v2189_v44 = vshll.u32 %v2147_v50, 16 }
 0x2f3   : > { %v2141_v21 = vmax.f32 %v2129_v14, 0.0  ;;  %v2148_v22 = vpack.c.bf16 %v2140_v34, %v2140_v34  ;;  %v2297_v23 = vrot.slane %v6551_v7, 1  ;;  %v2298_v28 = vrot.slane %v6560_v18, 1 }
 0x2f4   : > { %v2184_v49 = vor.u32 %v2182_v42, %v2181_v60  ;;  %v2188_v27 = vrot.slane %v2186_v8, 7  ;;  %v2299_v30 = vrot.slane %v6566_v20, 1  ;;  %v2250_v36 = vshll.u32 %v6566_v20, 16 }
 0x2f5   : > { %v2149_v51 = vpack.c.bf16 %v2141_v21, %v2141_v21  ;;  %v2193_v31 = vshrl.u32 %v2148_v22, 16  ;;  %v2300_v32 = vrot.slane %v6570_v53, 1  ;;  %v2196_v40 = vshll.u32 %v2148_v22, 16 }
 0x2f6   : > { %v2191_v57 = vor.u32 %v2189_v44, %v2188_v27  ;;  %v2218_v59 = vsel %vm6403_vm3, 0, %v2184_v49  ;;  %v2335_v41 = vrot.slane %v2298_v28, %v6267_v37  ;;  %v2319_v47 = vrot.slane %v2297_v23, %v6267_v37 }
 0x2f7   : > { %v6582_v45 = vsel %vm6543_vm6, %v2218_v59, 0  ;;  %v2195_v29 = vrot.slane %v2193_v31, 7  ;;  %v2200_v46 = vshrl.u32 %v2149_v51, 16  ;;  %v2203_v54 = vshll.u32 %v2149_v51, 16 }
 0x2f8   : > { %v2219_v38 = vsel %vm6403_vm3, 0, %v2191_v57  ;;  %v2264_v52 = vshll.u32 %v6582_v45, 16  ;;  %v2351_v61 = vrot.slane %v2299_v30, %v6267_v37  ;;  %v2367_v24 = vrot.slane %v2300_v32, %v6267_v37 }
 0x2f9   : > { %v6591_v63 = vsel %vm6543_vm6, %v2219_v38, 0  ;;  %v2198_v0 = vor.u32 %v2196_v40, %v2195_v29  ;;  %v2202_v1 = vrot.slane %v2200_v46, 7  ;;  %v2301_v25 = vrot.slane %v6582_v45, 1 }
 0x2fa   : > { %v4744_v39 = vcombine.low %v2319_v47, %v2335_v41  ;;  %v2234_v43 = vshrl.u32 %v6551_v7, 16  ;;  %v2238_v26 = vrot.slane %v2236_v35, 1  ;;  %v2302_v55 = vrot.slane %v6591_v63, 1 }
 0x2fb   : > { %v2205_v56 = vor.u32 %v2203_v54, %v2202_v1  ;;  %v2220_v58 = vsel %vm6403_vm3, 0, %v2198_v0  ;;  %v4746_v62 = vcombine.low %v2351_v61, %v2367_v24  ;;  %v2241_v2 = vshrl.u32 %v6560_v18, 16 }
 0x2fc   : > { %v6601_v3 = vsel %vm6543_vm6, %v2220_v58, 0  ;;  %v2239_v4 = vor.u32 %v2238_v26, %v2234_v43  ;;  %v2243_v17 = vshll.u32 %v6560_v18, 16  ;;  %v2505_v10 = vrot.slane %v4744_v39, %v6267_v37 }
 0x2fd   : > { %v2221_v5 = vsel %vm6403_vm3, 0, %v2205_v56  ;;  %v2303_v6 = vrot.slane %v6601_v3, 1  ;;  %v2519_v11 = vrot.slane %v4746_v62, %v6267_v37  ;;  %v2248_v33 = vshrl.u32 %v6566_v20, 16 }
 0x2fe   : > { %v2232_v12 = vsel %vm6543_vm6, %v2221_v5, 0  ;;  %v2245_v13 = vrot.slane %v2243_v17, 1  ;;  %v2252_v14 = vrot.slane %v2250_v36, 1  ;;  %v2255_v50 = vshrl.u32 %v6570_v53, 16 }
 0x2ff   : > { %v2304_v35 = vrot.slane %v2232_v12, 1  ;;  %v2522_v15 = vcombine.low %v2505_v10, %v2519_v11  ;;  %v2257_v16 = vshll.u32 %v6570_v53, 16  ;;  %v2305_v60 = vcombine.low %v6551_v7, %v2239_v4 }
 0x300   : > { %v2246_v19 = vor.u32 %v2245_v13, %v2241_v2  ;;  %v2253_v34 = vor.u32 %v2252_v14, %v2248_v33  ;;  %v2383_v42 = vrot.slane %v2301_v25, %v6267_v37  ;;  %v2399_v44 = vrot.slane %v2302_v55, %v6267_v37 }
 0x301   : > { %5175 = vmatprep.mubr.bf16.mxu1 %v2522_v15  ;;  %v2259_v8 = vrot.slane %v2257_v16, 1  ;;  %v2415_v21 = vrot.slane %v2303_v6, %v6267_v37  ;;  %v2431_v22 = vrot.slane %v2304_v35, %v6267_v37  ;;  %v2278_v23 = vshll.u32 %v6601_v3, 16  ;;  %v5437_v35 = vld [vmem:[%s7149_s8] sm:$0xff]   ;;  %v5440_v16 = vld [vmem:[%s7149_s8 + $0x8] sm:$0xff]  }
 0x302   : > { %v2321_v49 = vcombine.low %v6560_v18, %v2246_v19  ;;  %v2337_v27 = vcombine.low %v6566_v20, %v2253_v34  ;;  %v2262_v28 = vshrl.u32 %v6582_v45, 16  ;;  %v4748_v7 = vcombine.low %v2383_v42, %v2399_v44  ;;  %v5438_v15 = vld [vmem:[%s7149_s8 + $0x80] sm:$0xff]   ;;  %v5441_v19 = vld [vmem:[%s7149_s8 + $0x88] sm:$0xff]   ;;  %v5442_v34 = vld [vmem:[%s7149_s8 + $0x50] sm:$0xff]  }
 0x303   : > { %v2260_v30 = vor.u32 %v2259_v8, %v2255_v50  ;;  %v4750_v36 = vcombine.low %v2415_v21, %v2431_v22  ;;  %v2266_v51 = vrot.slane %v2264_v52, 1  ;;  %v2312_v31 = vrot.slane %v2305_v60, %v6267_v37  ;;  %5179 = vmatprep.subr.bf16.mxu1 %v5438_v15  ;;  %v5439_v50 = vld [vmem:[%s7149_s8 + $0x48] sm:$0xff]   ;;  %v5443_v60 = vld [vmem:[%s7149_s8 + $0x10] sm:$0xff]   ;;  %v5445_v8 = vld [vmem:[%s7149_s8 + $0x58] sm:$0xff]  }
 0x304   : > { %v2328_v32 = vrot.slane %v2321_v49, %v6267_v37  ;;  %v2344_v57 = vrot.slane %v2337_v27, %v6267_v37  ;;  %v2271_v59 = vshll.u32 %v6591_v63, 16  ;;  %v2540_v18 = vrot.slane %v4748_v7, %v6267_v37  ;;  %v5444_v42 = vld [vmem:[%s7149_s8 + $0x90] sm:$0xff]   ;;  %v5446_v44 = vld [vmem:[%s7149_s8 + $0x18] sm:$0xff]   ;;  %v5448_v22 = vld [vmem:[%s7149_s8 + $0x60] sm:$0xff]  }
 0x305   : > { %v2353_v40 = vcombine.low %v6570_v53, %v2260_v30  ;;  %v2554_v20 = vrot.slane %v4750_v36, %v6267_v37  ;;  %v2267_v41 = vor.u32 %v2266_v51, %v2262_v28  ;;  %v2269_v29 = vshrl.u32 %v6591_v63, 16  ;;  %v5447_v21 = vld [vmem:[%s7149_s8 + $0x98] sm:$0xff]   ;;  %v5450_v49 = vld [vmem:[%s7149_s8 + $0xa0] sm:$0xff]   ;;  %v5451_v27 = vld [vmem:[%s7149_s8 + $0x68] sm:$0xff]  }
 0x306   : > { %v2273_v46 = vrot.slane %v2271_v59, 1  ;;  %v2276_v47 = vshrl.u32 %v6601_v3, 16  ;;  %v2280_v38 = vrot.slane %v2278_v23, 1  ;;  %v4743_v54 = vcombine.low %v2312_v31, %v2328_v32  ;;  %v5449_v23 = vld [vmem:[%s7149_s8 + $0x20] sm:$0xff]   ;;  %v5452_v28 = vld [vmem:[%s7149_s8 + $0x28] sm:$0xff]   ;;  %v5454_v7 = vld [vmem:[%s7149_s8 + $0x70] sm:$0xff]  }
 0x307   : > { %v2360_v52 = vrot.slane %v2353_v40, %v6267_v37  ;;  %v2557_v61 = vcombine.low %v2540_v18, %v2554_v20  ;;  %v2285_v0 = vshll.u32 %v2232_v12, 16  ;;  %v2283_v53 = vshrl.u32 %v2232_v12, 16  ;;  %v5453_v30 = vld [vmem:[%s7149_s8 + $0xa8] sm:$0xff]   ;;  %v5456_v36 = vld [vmem:[%s7149_s8 + $0xb0] sm:$0xff]   ;;  %v5457_v31 = vld [vmem:[%s7149_s8 + $0x78] sm:$0xff]  }
 0x308   : > { %v2274_v1 = vor.u32 %v2273_v46, %v2269_v29  ;;  %v2281_v24 = vor.u32 %v2280_v38, %v2276_v47  ;;  %v2369_v43 = vcombine.low %v6582_v45, %v2267_v41  ;;  %v2498_v55 = vrot.slane %v4743_v54, %v6267_v37  ;;  %v5455_v51 = vld [vmem:[%s7149_s8 + $0x30] sm:$0xff]   ;;  %v5459_v32 = vld [vmem:[%s7149_s8 + $0xb8] sm:$0xff]   ;;  %v4742_v46 = vld [vmem:[%s7206_s9] ss:$0 sm:$0xff] }
 0x309   : > { %v4745_v25 = vcombine.low %v2344_v57, %v2360_v52  ;;  %5176 = vmatmul.mubr.bf16.vlgmr.msra.gmra.mrb[24].mxu1 %v2557_v61  ;;  %v2287_v39 = vrot.slane %v2285_v0, 1  ;;  %v5458_v57 = vld [vmem:[%s7149_s8 + $0x38] sm:$0xff]  }
 0x30a   : > { %v2385_v26 = vcombine.low %v6591_v63, %v2274_v1  ;;  %v2401_v62 = vcombine.low %v6601_v3, %v2281_v24  ;;  %v2376_v5 = vrot.slane %v2369_v43, %v6267_v37  ;;  %5180 = vmatpush3.bf16.msra.mxu1 %v5438_v15 }
 0x30b   : > { %v2512_v56 = vrot.slane %v4745_v25, %v6267_v37  ;;  %v2288_v58 = vor.u32 %v2287_v39, %v2283_v53  ;;  %5181 = vmatprep.subr.bf16.mxu1 %v5441_v19 }
 0x30c   : > { %v2392_v4 = vrot.slane %v2385_v26, %v6267_v37  ;;  %v2408_v10 = vrot.slane %v2401_v62, %v6267_v37 }
 0x30d   : > { %v2520_v2 = vcombine.low %v2498_v55, %v2512_v56  ;;  %v2521_v17 = vcombine.high %v2498_v55, %v2512_v56  ;;  %v2417_v6 = vcombine.low %v2232_v12, %v2288_v58  ;;  %v5436_v12 = vld [vmem:[%s7149_s8 + $0x40] sm:$0xff]  }
 0x30e   : > { %v4747_v63 = vcombine.low %v2376_v5, %v2392_v4  ;;  %5075 = vmatprep.subr.bf16.mxu0 %v5436_v12  ;;  %5182 = vmatpush3.bf16.msra.mxu1 %v5441_v19 }
 0x30f   : > { %2740 = vmatprep.mubr.bf16.mxu0 %v2521_v17  ;;  %v2424_v45 = vrot.slane %v2417_v6, %v6267_v37  ;;  %5183 = vmatprep.subr.bf16.mxu1 %v5444_v42 }
 0x310   : > { %2741 = vmatmul.mubr.bf16.vlgmr.msra.gmra.mrb[24].mxu0 %v2520_v2  ;;  %v2533_v13 = vrot.slane %v4747_v63, %v6267_v37 }
 0x311   : > { %v4749_v11 = vcombine.low %v2408_v10, %v2424_v45  ;;  %5076 = vmatpush3.bf16.msra.mxu0 %v5437_v35 }
 0x312   : > { %5077 = vmatprep.subr.bf16.mxu0 %v5439_v50  ;;  %5184 = vmatpush3.bf16.msra.mxu1 %v5444_v42 }
 0x313   : > { %v2547_v33 = vrot.slane %v4749_v11, %v6267_v37  ;;  %5185 = vmatprep.subr.bf16.mxu1 %v5447_v21 }
 0x315   : > { %v2556_v3 = vcombine.high %v2533_v13, %v2547_v33  ;;  %v2555_v14 = vcombine.low %v2533_v13, %v2547_v33  ;;  %5078 = vmatpush3.bf16.msra.mxu0 %v5440_v16 }
 0x316   : > { %5079 = vmatprep.subr.bf16.mxu0 %v5442_v34  ;;  %5186 = vmatpush3.bf16.msra.mxu1 %v5447_v21 }
 0x317   : > { %2748 = vmatprep.mubr.bf16.mxu0 %v2556_v3  ;;  %5187 = vmatprep.subr.bf16.mxu1 %v5450_v49 }
 0x318   : > { %2749 = vmatmul.mubr.bf16.gmra.mrb[28].mxu0 %v2555_v14 }
 0x319   : > { %5080 = vmatpush3.bf16.msra.mxu0 %v5443_v60 }
 0x31a   : > { %5081 = vmatprep.subr.bf16.mxu0 %v5445_v8  ;;  %5188 = vmatpush3.bf16.msra.mxu1 %v5450_v49 }
 0x31b   : > { %5189 = vmatprep.subr.bf16.mxu1 %v5453_v30 }
 0x31d   : > { %5082 = vmatpush3.bf16.msra.mxu0 %v5446_v44 }
 0x31e   : > { %5083 = vmatprep.subr.bf16.mxu0 %v5448_v22  ;;  %5190 = vmatpush3.bf16.msra.mxu1 %v5453_v30 }
 0x31f   : > { %5191 = vmatprep.subr.bf16.mxu1 %v5456_v36 }
 0x321   : > { %5084 = vmatpush3.bf16.msra.mxu0 %v5449_v23 }
 0x322   : > { %5085 = vmatprep.subr.bf16.mxu0 %v5451_v27  ;;  %5192 = vmatpush3.bf16.msra.mxu1 %v5456_v36 }
 0x323   : > { %5193 = vmatprep.subr.bf16.mxu1 %v5459_v32 }
 0x325   : > { %5086 = vmatpush3.bf16.msra.mxu0 %v5452_v28 }
 0x326   : > { %5087 = vmatprep.subr.bf16.mxu0 %v5454_v7  ;;  %5194 = vmatpush3.bf16.msra.mxu1 %v5459_v32 }
 0x329   : > { %5088 = vmatpush3.bf16.msra.mxu0 %v5455_v51 }
 0x32a   : > { %5089 = vmatprep.subr.bf16.mxu0 %v5457_v31 }
 0x32d   : > { %5090 = vmatpush3.bf16.msra.mxu0 %v5458_v57 }
 0x3dc   : > { %v5177_v59 = vpop.f32.mrb[24].mxu1 }
 0x3dd   : > { %v2791_v40 = vpop.f32.mrb[25].mxu1 }
 0x3de   : > { %v5178_v18 = vpop.f32.mrb[26].mxu1 }
 0x3df   : > { %v2794_v20 = vpop.f32.mrb[27].mxu1 }
 0x3e3   : > { %v5053_v41 = vpop.f32.mrb[24].mxu0 }
 0x3e4   : > { %v5054_v29 = vpop.f32.mrb[25].mxu0 }
 0x3e5   : > { %v5055_v47 = vadd.f32 %v5054_v29, %v5053_v41  ;;  %v5056_v38 = vpop.f32.mrb[26].mxu0 }
 0x3e6   : > { %v5057_v52 = vpop.f32.mrb[27].mxu0 }
 0x3e7   : > { %v2743_v54 = vadd.f32 %v5055_v47, %v4742_v46  ;;  %v5058_v61 = vadd.f32 %v5057_v52, %v5056_v38 }
 0x3e9   : > { %v6720_v0 = vadd.f32 %v2791_v40, %v2743_v54  ;;  %v2746_v1 = vadd.f32 %v5058_v61, %v4742_v46 }
 0x3eb   : > { %v6724_v24 = vcombine.high %v6720_v0, %v6720_v0  ;;  %v2818_v25 = vmax.f32 %v6720_v0, 0.0  ;;  %v6727_v53 = vadd.f32 %v2794_v20, %v2746_v1  ;;  %v5059_v39 = vpop.f32.mrb[28].mxu0 }
 0x3ec   : > { %v5060_v43 = vpop.f32.mrb[29].mxu0 }
 0x3ed   : > { %v2819_v26 = vmax.f32 %v6724_v24, 0.0  ;;  %v2826_v55 = vpack.c.bf16 %v2818_v25, %v2818_v25  ;;  %v6732_v56 = vcombine.high %v6727_v53, %v6727_v53  ;;  %v2820_v58 = vmax.f32 %v6727_v53, 0.0  ;;  %v5062_v62 = vpop.f32.mrb[30].mxu0 }
 0x3ee   : > { %v5061_v4 = vadd.f32 %v5060_v43, %v5059_v39  ;;  %v5063_v2 = vpop.f32.mrb[31].mxu0 }
 0x3ef   : > { %v2827_v17 = vpack.c.bf16 %v2819_v26, %v2819_v26  ;;  %v2835_v5 = vshrl.u32 %v2826_v55, 16  ;;  %v2821_v6 = vmax.f32 %v6732_v56, 0.0  ;;  %v2828_v10 = vpack.c.bf16 %v2820_v58, %v2820_v58 }
 0x3f0   : > { %v2751_v45 = vadd.f32 %v5061_v4, %v4742_v46  ;;  %v5064_v63 = vadd.f32 %v5063_v2, %v5062_v62  ;;  %v2838_v13 = vshll.u32 %v2826_v55, 16 }
 0x3f1   : > { %v2837_v11 = vrot.slane %v2835_v5, 7  ;;  %v2842_v33 = vshrl.u32 %v2827_v17, 16  ;;  %v2829_v3 = vpack.c.bf16 %v2821_v6, %v2821_v6  ;;  %v2845_v14 = vshll.u32 %v2827_v17, 16 }
 0x3f2   : > { %v2849_v12 = vshrl.u32 %v2828_v10, 16  ;;  %v6736_v35 = vadd.f32 %v5177_v59, %v2751_v45  ;;  %v2754_v15 = vadd.f32 %v5064_v63, %v4742_v46  ;;  %v2852_v19 = vshll.u32 %v2828_v10, 16 }
 0x3f3   : > { %v2840_v50 = vor.u32 %v2838_v13, %v2837_v11  ;;  %v2844_v16 = vrot.slane %v2842_v33, 7  ;;  %v2856_v34 = vshrl.u32 %v2829_v3, 16  ;;  %v2859_v49 = vshll.u32 %v2829_v3, 16 }
 0x3f4   : > { %v2851_v60 = vrot.slane %v2849_v12, 7  ;;  %v6740_v42 = vcombine.high %v6736_v35, %v6736_v35  ;;  %v2822_v8 = vmax.f32 %v6736_v35, 0.0  ;;  %v6743_v44 = vadd.f32 %v5178_v18, %v2754_v15 }
 0x3f5   : > { %v2847_v21 = vor.u32 %v2845_v14, %v2844_v16  ;;  %v2898_v22 = vsel %vm6403_vm3, 0, %v2840_v50  ;;  %v2858_v23 = vrot.slane %v2856_v34, 7 }
 0x3f6   : > { %v6749_v27 = vsel %vm6543_vm6, %v2898_v22, 0  ;;  %v2854_v28 = vor.u32 %v2852_v19, %v2851_v60  ;;  %v2823_v30 = vmax.f32 %v6740_v42, 0.0  ;;  %v2830_v7 = vpack.c.bf16 %v2822_v8, %v2822_v8 }
 0x3f7   : > { %v2899_v36 = vsel %vm6403_vm3, 0, %v2847_v21  ;;  %v2861_v51 = vor.u32 %v2859_v49, %v2858_v23  ;;  %v6756_v31 = vcombine.high %v6743_v44, %v6743_v44  ;;  %v2824_v32 = vmax.f32 %v6743_v44, 0.0 }
 0x3f8   : > { %v6761_v57 = vsel %vm6543_vm6, %v2899_v36, 0  ;;  %v2900_v59 = vsel %vm6403_vm3, 0, %v2854_v28  ;;  %v2831_v40 = vpack.c.bf16 %v2823_v30, %v2823_v30  ;;  %v2863_v18 = vshrl.u32 %v2830_v7, 16 }
 0x3f9   : > { %v2901_v20 = vsel %vm6403_vm3, 0, %v2861_v51  ;;  %v6769_v41 = vsel %vm6543_vm6, %v2900_v59, 0  ;;  %v2866_v29 = vshll.u32 %v2830_v7, 16  ;;  %v2825_v46 = vmax.f32 %v6756_v31, 0.0 }
 0x3fa   : > { %v6774_v47 = vsel %vm6543_vm6, %v2901_v20, 0  ;;  %v2865_v38 = vrot.slane %v2863_v18, 7  ;;  %v2870_v52 = vshrl.u32 %v2831_v40, 16  ;;  %v2873_v54 = vshll.u32 %v2831_v40, 16 }
 0x3fb   : > { %v2832_v61 = vpack.c.bf16 %v2824_v32, %v2824_v32  ;;  %v2833_v1 = vpack.c.bf16 %v2825_v46, %v2825_v46  ;;  %v2978_v25 = vrot.slane %v6749_v27, 1  ;;  %v2979_v39 = vrot.slane %v6761_v57, 1 }
 0x3fc   : > { %v2868_v43 = vor.u32 %v2866_v29, %v2865_v38  ;;  %v2872_v26 = vrot.slane %v2870_v52, 7  ;;  %v2980_v55 = vrot.slane %v6769_v41, 1  ;;  %v2981_v58 = vrot.slane %v6774_v47, 1 }
 0x3fd   : > { %v2877_v62 = vshrl.u32 %v2832_v61, 16  ;;  %v2880_v4 = vshll.u32 %v2832_v61, 16  ;;  %v2884_v2 = vshrl.u32 %v2833_v1, 16  ;;  %v2887_v17 = vshll.u32 %v2833_v1, 16 }
 0x3fe   : > { %v2875_v5 = vor.u32 %v2873_v54, %v2872_v26  ;;  %v2902_v6 = vsel %vm6403_vm3, 0, %v2868_v43  ;;  %v3000_v10 = vrot.slane %v2978_v25, %v6267_v37  ;;  %v3016_v45 = vrot.slane %v2979_v39, %v6267_v37 }
 0x3ff   : > { %v6786_v63 = vsel %vm6543_vm6, %v2902_v6, 0  ;;  %v2879_v11 = vrot.slane %v2877_v62, 7  ;;  %v2886_v13 = vrot.slane %v2884_v2, 7  ;;  %v3032_v33 = vrot.slane %v2980_v55, %v6267_v37 }
 0x400   : > { %v2903_v3 = vsel %vm6403_vm3, 0, %v2875_v5  ;;  %v3048_v14 = vrot.slane %v2981_v58, %v6267_v37  ;;  %v4777_v12 = vcombine.low %v3000_v10, %v3016_v45  ;;  %v2915_v15 = vshrl.u32 %v6749_v27, 16 }
 0x401   : > { %v6795_v50 = vsel %vm6543_vm6, %v2903_v3, 0  ;;  %v2882_v16 = vor.u32 %v2880_v4, %v2879_v11  ;;  %v2889_v19 = vor.u32 %v2887_v17, %v2886_v13  ;;  %v2917_v34 = vshll.u32 %v6749_v27, 16 }
 0x402   : > { %v4779_v60 = vcombine.low %v3032_v33, %v3048_v14  ;;  %v3186_v8 = vrot.slane %v4777_v12, %v6267_v37  ;;  %v2922_v21 = vshrl.u32 %v6761_v57, 16  ;;  %v2924_v22 = vshll.u32 %v6761_v57, 16 }
 0x403   : > { %v2904_v23 = vsel %vm6403_vm3, 0, %v2882_v16  ;;  %v2905_v49 = vsel %vm6403_vm3, 0, %v2889_v19  ;;  %v2919_v28 = vrot.slane %v2917_v34, 1  ;;  %v2929_v30 = vshrl.u32 %v6769_v41, 16 }
 0x404   : > { %v6808_v7 = vsel %vm6543_vm6, %v2904_v23, 0  ;;  %v6812_v36 = vsel %vm6543_vm6, %v2905_v49, 0  ;;  %v3200_v51 = vrot.slane %v4779_v60, %v6267_v37  ;;  %v2926_v32 = vrot.slane %v2924_v22, 1 }
 0x405   : > { %v2920_v59 = vor.u32 %v2919_v28, %v2915_v15  ;;  %v2931_v40 = vshll.u32 %v6769_v41, 16  ;;  %v2936_v18 = vshrl.u32 %v6774_v47, 16  ;;  %v2938_v20 = vshll.u32 %v6774_v47, 16 }
 0x406   : > { %v3203_v29 = vcombine.low %v3186_v8, %v3200_v51  ;;  %v2927_v46 = vor.u32 %v2926_v32, %v2922_v21  ;;  %v2982_v38 = vrot.slane %v6786_v63, 1  ;;  %v2983_v52 = vrot.slane %v6795_v50, 1 }
 0x407   : > { %v2933_v54 = vrot.slane %v2931_v40, 1  ;;  %v2940_v61 = vrot.slane %v2938_v20, 1  ;;  %v2986_v1 = vcombine.low %v6749_v27, %v2920_v59  ;;  %v2984_v25 = vrot.slane %v6808_v7, 1 }
 0x408   : > { %5195 = vmatprep.mubr.bf16.mxu1 %v3203_v29  ;;  %v3002_v39 = vcombine.low %v6761_v57, %v2927_v46  ;;  %v2985_v43 = vrot.slane %v6812_v36, 1  ;;  %v3064_v26 = vrot.slane %v2982_v38, %v6267_v37  ;;  %v3080_v55 = vrot.slane %v2983_v52, %v6267_v37 }
 0x409   : > { %v2934_v58 = vor.u32 %v2933_v54, %v2929_v30  ;;  %v2941_v62 = vor.u32 %v2940_v61, %v2936_v18  ;;  %v2993_v4 = vrot.slane %v2986_v1, %v6267_v37  ;;  %v3096_v17 = vrot.slane %v2984_v25, %v6267_v37 }
 0x40a   : > { %v3009_v2 = vrot.slane %v3002_v39, %v6267_v37  ;;  %v3112_v27 = vrot.slane %v2985_v43, %v6267_v37  ;;  %v4781_v5 = vcombine.low %v3064_v26, %v3080_v55  ;;  %v2945_v10 = vshll.u32 %v6786_v63, 16 }
 0x40b   : > { %v3018_v6 = vcombine.low %v6769_v41, %v2934_v58  ;;  %v3034_v57 = vcombine.low %v6774_v47, %v2941_v62  ;;  %v2943_v13 = vshrl.u32 %v6786_v63, 16  ;;  %v2952_v33 = vshll.u32 %v6795_v50, 16 }
 0x40c   : > { %v4776_v45 = vcombine.low %v2993_v4, %v3009_v2  ;;  %v4783_v11 = vcombine.low %v3096_v17, %v3112_v27  ;;  %v2947_v12 = vrot.slane %v2945_v10, 1  ;;  %v2950_v15 = vshrl.u32 %v6795_v50, 16 }
 0x40d   : > { %v3025_v3 = vrot.slane %v3018_v6, %v6267_v37  ;;  %v3041_v14 = vrot.slane %v3034_v57, %v6267_v37  ;;  %v3221_v16 = vrot.slane %v4781_v5, %v6267_v37  ;;  %v2954_v47 = vrot.slane %v2952_v33, 1  ;;  %v4775_v5 = vld [vmem:[%s7208_s21] ss:$0 sm:$0xff]  ;;  %s4868_s21 = sshll.u32 %s5831_s25, 9 }
 0x40e   : > { %v3235_v41 = vrot.slane %v4783_v11, %v6267_v37  ;;  %v2959_v19 = vshll.u32 %v6808_v7, 16  ;;  %v2948_v60 = vor.u32 %v2947_v12, %v2943_v13  ;;  %v2957_v8 = vshrl.u32 %v6808_v7, 16  ;;  %s7097_s15 = scalar_lea.hbm %s7212_s19, %s4868_s21 }
 0x40f   : > { %v4778_v34 = vcombine.low %v3025_v3, %v3041_v14  ;;  %v2966_v21 = vshll.u32 %v6812_v36, 16  ;;  %v3179_v22 = vrot.slane %v4776_v45, %v6267_v37  ;;  %v2955_v49 = vor.u32 %v2954_v47, %v2950_v15 }
 0x410   : > { %v3238_v23 = vcombine.low %v3221_v16, %v3235_v41  ;;  %v2961_v28 = vrot.slane %v2959_v19, 1  ;;  %v2964_v51 = vshrl.u32 %v6812_v36, 16  ;;  %v3050_v59 = vcombine.low %v6786_v63, %v2948_v60 }
 0x411   : > { %v3193_v30 = vrot.slane %v4778_v34, %v6267_v37  ;;  %v2968_v32 = vrot.slane %v2966_v21, 1  ;;  %v3066_v18 = vcombine.low %v6795_v50, %v2955_v49 }
 0x412   : > { %5196 = vmatmul.mubr.bf16.vlgmr.msra.gmra.mrb[28].mxu1 %v3238_v23  ;;  %v2962_v40 = vor.u32 %v2961_v28, %v2957_v8  ;;  %v3057_v54 = vrot.slane %v3050_v59, %v6267_v37 }
 0x413   : > { %v3201_v20 = vcombine.low %v3179_v22, %v3193_v30  ;;  %v3202_v29 = vcombine.high %v3179_v22, %v3193_v30  ;;  %v2969_v46 = vor.u32 %v2968_v32, %v2964_v51  ;;  %v3073_v38 = vrot.slane %v3066_v18, %v6267_v37 }
 0x414   : > { %v3082_v52 = vcombine.low %v6808_v7, %v2962_v40  ;;  %v5460_v7 = vld [vmem:[%s7207_s14] sm:$0xff]  }
 0x415   : > { %3421 = vmatprep.mubr.bf16.mxu0 %v3202_v29  ;;  %v3098_v61 = vcombine.low %v6812_v36, %v2969_v46  ;;  %v4780_v25 = vcombine.low %v3057_v54, %v3073_v38  ;;  %5199 = vmatprep.subr.bf16.mxu1 %v5460_v7  ;;  %v5461_v36 = vld [vmem:[%s7207_s14 + $0x8] sm:$0xff]  }
 0x416   : > { %3422 = vmatmul.mubr.bf16.vlgmr.msra.gmra.mrb[32].mxu0 %v3201_v20  ;;  %v3089_v1 = vrot.slane %v3082_v52, %v6267_v37  ;;  %5200 = vmatpush3.bf16.msra.mxu1 %v5460_v7  ;;  %v5466_v7 = vld [vmem:[%s7209_s4 + $0x90] sm:$0xff]  }
 0x417   : > { %v3105_v63 = vrot.slane %v3098_v61, %v6267_v37  ;;  %v3214_v50 = vrot.slane %v4780_v25, %v6267_v37  ;;  %5201 = vmatprep.subr.bf16.mxu1 %v5461_v36 }
 0x419   : > { %v4782_v39 = vcombine.low %v3089_v1, %v3105_v63 }
 0x41a   : > { %5202 = vmatpush3.bf16.msra.mxu1 %v5461_v36  ;;  %v5467_v36 = vld [vmem:[%s7209_s4 + $0x48] sm:$0xff]  }
 0x41b   : > { %v3228_v43 = vrot.slane %v4782_v39, %v6267_v37 }
 0x41d   : > { %v3237_v26 = vcombine.high %v3214_v50, %v3228_v43  ;;  %v3236_v55 = vcombine.low %v3214_v50, %v3228_v43  ;;  %v5462_v50 = vld [vmem:[%s7209_s4 + $0x80] sm:$0xff]   ;;  %v5463_v43 = vld [vmem:[%s7209_s4 + $0x88] sm:$0xff]  }
 0x41e   : > { %5207 = vmatprep.subr.bf16.mxu1 %v5462_v50 }
 0x41f   : > { %3429 = vmatprep.mubr.bf16.mxu0 %v3237_v26  ;;  %v5464_v26 = vld [vmem:[%s7209_s4 + $0x40] sm:$0xff]  }
 0x420   : > { %3430 = vmatmul.mubr.bf16.gmra.mrb[36].mxu0 %v3236_v55  ;;  %v5465_v55 = vld [vmem:[%s7209_s4] sm:$0xff]   ;;  %5117 = vmatprep.subr.bf16.mxu0 %v5464_v26 }
 0x421   : > { %5118 = vmatpush3.bf16.msra.mxu0 %v5465_v55 }
 0x422   : > { %5119 = vmatprep.subr.bf16.mxu0 %v5467_v36 }
 0x4e5   : > { %v5197_v58 = vpop.f32.mrb[28].mxu1 }
 0x4e6   : > { %v3472_v62 = vpop.f32.mrb[29].mxu1 }
 0x4e7   : > { %v5198_v4 = vpop.f32.mrb[30].mxu1 }
 0x4e8   : > { %v3475_v2 = vpop.f32.mrb[31].mxu1 }
 0x4e9   : > { %v5091_v17 = vpop.f32.mrb[32].mxu0 }
 0x4ea   : > { %v5092_v27 = vpop.f32.mrb[33].mxu0 }
 0x4eb   : > { %v5093_v6 = vadd.f32 %v5092_v27, %v5091_v17  ;;  %v5094_v57 = vpop.f32.mrb[34].mxu0  ;;  %v5472_v17 = vld [vmem:[%s7209_s4 + $0xa0] sm:$0xff]   ;;  %v5473_v27 = vld [vmem:[%s7209_s4 + $0x58] sm:$0xff]  }
 0x4ec   : > { %v5095_v10 = vpop.f32.mrb[35].mxu0 }
 0x4ed   : > { %v3424_v45 = vadd.f32 %v5093_v6, %v4775_v5  ;;  %v5096_v11 = vadd.f32 %v5095_v10, %v5094_v57  ;;  %v5475_v6 = vld [vmem:[%s7209_s4 + $0xa8] sm:$0xff]   ;;  %v5476_v57 = vld [vmem:[%s7209_s4 + $0x60] sm:$0xff]  }
 0x4ee   : > { %v5477_v10 = vld [vmem:[%s7209_s4 + $0x20] sm:$0xff]  }
 0x4ef   : > { %v3473_v13 = vadd.f32 %v3472_v62, %v3424_v45  ;;  %v3427_v33 = vadd.f32 %v5096_v11, %v4775_v5  ;;  %v5469_v62 = vld [vmem:[%s7209_s4 + $0x98] sm:$0xff]   ;;  %v5478_v45 = vld [vmem:[%s7209_s4 + $0xb0] sm:$0xff]   ;;  %v5479_v11 = vld [vmem:[%s7209_s4 + $0x68] sm:$0xff]  }
 0x4f1   : > { %v3491_v3 = vcombine.high %v3473_v13, %v3473_v13  ;;  %v3476_v14 = vadd.f32 %v3475_v2, %v3427_v33  ;;  %v3499_v12 = vmax.f32 %v3473_v13, 0.0  ;;  %v5471_v2 = vld [vmem:[%s7209_s4 + $0x10] sm:$0xff]   ;;  %v5481_v13 = vld [vmem:[%s7209_s4 + $0xb8] sm:$0xff]   ;;  %v5480_v33 = vld [vmem:[%s7209_s4 + $0x28] sm:$0xff]  }
 0x4f3   : > { %v3500_v15 = vmax.f32 %v3491_v3, 0.0  ;;  %v3492_v16 = vcombine.high %v3476_v14, %v3476_v14  ;;  %v5097_v41 = vpop.f32.mrb[36].mxu0  ;;  %v3501_v34 = vmax.f32 %v3476_v14, 0.0  ;;  %v5482_v3 = vld [vmem:[%s7209_s4 + $0x70] sm:$0xff]  }
 0x4f4   : > { %v5098_v47 = vpop.f32.mrb[37].mxu0  ;;  %v5483_v14 = vld [vmem:[%s7209_s4 + $0x30] sm:$0xff]  }
 0x4f5   : > { %v4809_v19 = vpack.c.bf16 %v3500_v15, %v3499_v12  ;;  %v3502_v60 = vmax.f32 %v3492_v16, 0.0  ;;  %v5099_v8 = vadd.f32 %v5098_v47, %v5097_v41  ;;  %v5100_v21 = vpop.f32.mrb[38].mxu0  ;;  %v5484_v12 = vld [vmem:[%s7209_s4 + $0x78] sm:$0xff]   ;;  %v4808_v16 = vld [vmem:[%s7210_s30] ss:$0 sm:$0xff]  ;;  %s5722_s30 = smov [#allocation11]  }
 0x4f6   : > { %v5101_v22 = vpop.f32.mrb[39].mxu0  ;;  %v5485_v15 = vld [vmem:[%s7209_s4 + $0x38] sm:$0xff]   ;;  %s5636_s27 = sshll.u32 %s5722_s30, 4  ;;  %s5637_s27 = int_to_ptr.vmem [resolvable:$false] %s5636_s27 }
 0x4f7   : > { %v4810_v23 = vpack.c.bf16 %v3502_v60, %v3501_v34  ;;  %v3432_v49 = vadd.f32 %v5099_v8, %v4775_v5  ;;  %v5102_v28 = vadd.f32 %v5101_v22, %v5100_v21  ;;  %v3542_v30 = vrot.slane %v4809_v19, %v6267_v37  ;;  %s5638_s9 = scalar_lea.vmem %s5637_s27, 1024  ;;  %p5639_p8 = scmp.lt.s32.totalorder %s7091_s7, %s5637_s27 }
 0x4f8   : > { %p5640_p6 = scmp.lt.s32.totalorder %s5638_s9, %s5632_s17 }
 0x4f9   : > { %v3549_v51 = vrot.slane %v4810_v23, %v6267_v37  ;;  %v3481_v32 = vadd.f32 %v5197_v58, %v3432_v49  ;;  %v3435_v59 = vadd.f32 %v5102_v28, %v4775_v5  ;;  %v5468_v58 = vld [vmem:[%s7209_s4 + $0x8] sm:$0xff]   ;;  %v5474_v5 = vld [vmem:[%s7209_s4 + $0x18] sm:$0xff]  }
 0x4fa   : > { %5120 = vmatpush3.bf16.msra.mxu0 %v5468_v58  ;;  %p5641_p10 = por %p5640_p6, %p5639_p8 }
 0x4fb   : > { %v3493_v40 = vcombine.high %v3481_v32, %v3481_v32  ;;  %v3484_v18 = vadd.f32 %v5198_v4, %v3435_v59  ;;  %v3550_v20 = vcombine.low %v3542_v30, %v3549_v51  ;;  %v3503_v29 = vmax.f32 %v3481_v32, 0.0  ;;  %v5470_v4 = vld [vmem:[%s7209_s4 + $0x50] sm:$0xff]  }
 0x4fc   : > { %5121 = vmatprep.subr.bf16.mxu0 %v5470_v4  ;;  %p5642_p3 = pnand %p5641_p10, %p5635_p0 }
 0x4fd   : > { %v3504_v46 = vmax.f32 %v3493_v40, 0.0  ;;  %v3494_v38 = vcombine.high %v3484_v18, %v3484_v18  ;;  %5203 = vmatprep.mubr.msk.bf16.mxu1 %vm3580_vm7, %v3550_v20  ;;  %v3505_v54 = vmax.f32 %v3484_v18, 0.0 }
 0x4fe   : > { %5122 = vmatpush3.bf16.msra.mxu0 %v5471_v2 }
 0x4ff   : > { %v4811_v52 = vpack.c.bf16 %v3504_v46, %v3503_v29  ;;  %v3506_v61 = vmax.f32 %v3494_v38, 0.0  ;;  %5123 = vmatprep.subr.bf16.mxu0 %v5473_v27 }
 0x501   : > { %v4812_v1 = vpack.c.bf16 %v3506_v61, %v3505_v54  ;;  %v3559_v63 = vrot.slane %v4811_v52, %v6267_v37 }
 0x502   : > { %5124 = vmatpush3.bf16.msra.mxu0 %v5474_v5 }
 0x503   : > { %v3566_v25 = vrot.slane %v4812_v1, %v6267_v37  ;;  %5125 = vmatprep.subr.bf16.mxu0 %v5476_v57 }
 0x505   : > { %v3567_v39 = vcombine.low %v3559_v63, %v3566_v25 }
 0x506   : > { %5126 = vmatpush3.bf16.msra.mxu0 %v5477_v10 }
 0x507   : > { %5204 = vmatmul.mubr.msk.bf16.vlgmr.msra.gmra.mrb[32].mxu1 %vm3580_vm7, %v3567_v39  ;;  %5127 = vmatprep.subr.bf16.mxu0 %v5479_v11 }
 0x508   : > { %5208 = vmatpush3.bf16.msra.mxu1 %v5462_v50 }
 0x509   : > { %5209 = vmatprep.subr.bf16.mxu1 %v5463_v43 }
 0x50a   : > { %5128 = vmatpush3.bf16.msra.mxu0 %v5480_v33 }
 0x50b   : > { %5129 = vmatprep.subr.bf16.mxu0 %v5482_v3 }
 0x50c   : > { %5210 = vmatpush3.bf16.msra.mxu1 %v5463_v43 }
 0x50d   : > { %5211 = vmatprep.subr.bf16.mxu1 %v5466_v7 }
 0x50e   : > { %5130 = vmatpush3.bf16.msra.mxu0 %v5483_v14 }
 0x50f   : > { %5131 = vmatprep.subr.bf16.mxu0 %v5484_v12 }
 0x510   : > { %5212 = vmatpush3.bf16.msra.mxu1 %v5466_v7 }
 0x511   : > { %5213 = vmatprep.subr.bf16.mxu1 %v5469_v62 }
 0x512   : > { %5132 = vmatpush3.bf16.msra.mxu0 %v5485_v15 }
 0x514   : > { %5214 = vmatpush3.bf16.msra.mxu1 %v5469_v62 }
 0x515   : > { %5215 = vmatprep.subr.bf16.mxu1 %v5472_v17 }
 0x518   : > { %5216 = vmatpush3.bf16.msra.mxu1 %v5472_v17 }
 0x519   : > { %5217 = vmatprep.subr.bf16.mxu1 %v5475_v6 }
 0x51c   : > { %5218 = vmatpush3.bf16.msra.mxu1 %v5475_v6 }
 0x51d   : > { %5219 = vmatprep.subr.bf16.mxu1 %v5478_v45 }
 0x520   : > { %5220 = vmatpush3.bf16.msra.mxu1 %v5478_v45 }
 0x521   : > { %5221 = vmatprep.subr.bf16.mxu1 %v5481_v13 }
 0x524   : > { %5222 = vmatpush3.bf16.msra.mxu1 %v5481_v13 }
 0x5da   : > { %v5205_v41 = vpop.f32.mrb[32].mxu1 }
 0x5db   : > { %v3630_v47 = vadd.f32 %v5205_v41, %v4808_v16  ;;  %v3621_v19 = vpop.f32.mrb[33].mxu1 }
 0x5dc   : > { %v3622_v34 = vadd.f32 %v4808_v16, %v3621_v19  ;;  %v5206_v60 = vpop.f32.mrb[34].mxu1 }
 0x5dd   : > { %v3642_v8 = vcombine.high %v3630_v47, %v3630_v47  ;;  %v6947_v21 = vadd.f32 %v3630_v47, %v6736_v35  ;;  %v3633_v22 = vadd.f32 %v5206_v60, %v4808_v16  ;;  %v3624_v23 = vpop.f32.mrb[35].mxu1 }
 0x5de   : > { %v3640_v49 = vcombine.high %v3622_v34, %v3622_v34  ;;  %v6950_v28 = vadd.f32 %v3622_v34, %v6720_v0  ;;  %v3625_v30 = vadd.f32 %v4808_v16, %v3624_v23 }
 0x5df   : > { %v6953_v51 = vadd.f32 %v3642_v8, %v6740_v42  ;;  %v3660_v32 = vmax.f32 %v6947_v21, 0.0  ;;  %v3643_v59 = vcombine.high %v3633_v22, %v3633_v22  ;;  %v6957_v40 = vadd.f32 %v3633_v22, %v6743_v44 }
 0x5e0   : > { %v6960_v18 = vadd.f32 %v3640_v49, %v6724_v24  ;;  %v3656_v35 = vmax.f32 %v6950_v28, 0.0  ;;  %v3641_v20 = vcombine.high %v3625_v30, %v3625_v30  ;;  %v6964_v29 = vadd.f32 %v3625_v30, %v6727_v53 }
 0x5e1   : > { %v3661_v0 = vmax.f32 %v6953_v51, 0.0  ;;  %v3668_v46 = vpack.c.bf16 %v3660_v32, %v3660_v32  ;;  %v6968_v42 = vadd.f32 %v3643_v59, %v6756_v31  ;;  %v3662_v38 = vmax.f32 %v6957_v40, 0.0 }
 0x5e2   : > { %v3657_v44 = vmax.f32 %v6960_v18, 0.0  ;;  %v3664_v52 = vpack.c.bf16 %v3656_v35, %v3656_v35  ;;  %v6973_v24 = vadd.f32 %v3641_v20, %v6732_v56  ;;  %v3658_v54 = vmax.f32 %v6964_v29, 0.0 }
 0x5e3   : > { %v3669_v61 = vpack.c.bf16 %v3661_v0, %v3661_v0  ;;  %v3701_v1 = vshrl.u32 %v3668_v46, 16  ;;  %v3704_v53 = vshll.u32 %v3668_v46, 16  ;;  %v3663_v63 = vmax.f32 %v6968_v42, 0.0 }
 0x5e4   : > { %v3665_v25 = vpack.c.bf16 %v3657_v44, %v3657_v44  ;;  %v3673_v39 = vshrl.u32 %v3664_v52, 16  ;;  %v3676_v50 = vshll.u32 %v3664_v52, 16  ;;  %v3670_v31 = vpack.c.bf16 %v3662_v38, %v3662_v38 }
 0x5e5   : > { %v3703_v43 = vrot.slane %v3701_v1, 7  ;;  %v3708_v26 = vshrl.u32 %v3669_v61, 16  ;;  %v3711_v55 = vshll.u32 %v3669_v61, 16  ;;  %v3671_v7 = vpack.c.bf16 %v3663_v63, %v3663_v63 }
 0x5e6   : > { %v3675_v36 = vrot.slane %v3673_v39, 7  ;;  %v3680_v58 = vshrl.u32 %v3665_v25, 16  ;;  %v3683_v62 = vshll.u32 %v3665_v25, 16  ;;  %v3715_v56 = vshrl.u32 %v3670_v31, 16 }
 0x5e7   : > { %v3706_v4 = vor.u32 %v3704_v53, %v3703_v43  ;;  %v3710_v2 = vrot.slane %v3708_v26, 7  ;;  %v3718_v17 = vshll.u32 %v3670_v31, 16  ;;  %v3722_v27 = vshrl.u32 %v3671_v7, 16 }
 0x5e8   : > { %v3678_v5 = vor.u32 %v3676_v50, %v3675_v36  ;;  %v3682_v6 = vrot.slane %v3680_v58, 7  ;;  %v3717_v57 = vrot.slane %v3715_v56, 7  ;;  %v3725_v10 = vshll.u32 %v3671_v7, 16 }
 0x5e9   : > { %v3713_v45 = vor.u32 %v3711_v55, %v3710_v2  ;;  %v3740_v11 = vsel %vm6403_vm3, 0, %v3706_v4  ;;  %v3724_v13 = vrot.slane %v3722_v27, 7  ;;  %v3659_v33 = vmax.f32 %v6973_v24, 0.0 }
 0x5ea   : > { %v6982_v3 = vsel %vm6543_vm6, %v3740_v11, 0  ;;  %v3685_v14 = vor.u32 %v3683_v62, %v3682_v6  ;;  %v3736_v12 = vsel %vm6403_vm3, 0, %v3678_v5  ;;  %v3720_v15 = vor.u32 %v3718_v17, %v3717_v57 }
 0x5eb   : > { %v3741_v16 = vsel %vm6403_vm3, 0, %v3713_v45  ;;  %v6990_v41 = vsel %vm6543_vm6, %v3736_v12, 0  ;;  %v3727_v47 = vor.u32 %v3725_v10, %v3724_v13  ;;  %v3783_v34 = vshll.u32 %v6982_v3, 16 }
 0x5ec   : > { %v6994_v19 = vsel %vm6543_vm6, %v3741_v16, 0  ;;  %v3737_v60 = vsel %vm6403_vm3, 0, %v3685_v14  ;;  %v3742_v8 = vsel %vm6403_vm3, 0, %v3720_v15  ;;  %v3666_v30 = vpack.c.bf16 %v3658_v54, %v3658_v54 }
 0x5ed   : > { %v7003_v22 = vsel %vm6543_vm6, %v3737_v60, 0  ;;  %v3743_v23 = vsel %vm6403_vm3, 0, %v3727_v47  ;;  %v7009_v49 = vsel %vm6543_vm6, %v3742_v8, 0  ;;  %v3755_v32 = vshll.u32 %v6990_v41, 16 }
 0x5ee   : > { %v7014_v59 = vsel %vm6543_vm6, %v3743_v23, 0  ;;  %v3667_v35 = vpack.c.bf16 %v3659_v33, %v3659_v33  ;;  %v3816_v20 = vrot.slane %v6990_v41, 1  ;;  %v3797_v0 = vshll.u32 %v7009_v49, 16 }
 0x5ef   : > { %v3687_v46 = vshrl.u32 %v3666_v30, 16  ;;  %v3817_v38 = vrot.slane %v7003_v22, 1  ;;  %v3820_v44 = vrot.slane %v6982_v3, 1  ;;  %v3690_v52 = vshll.u32 %v3666_v30, 16 }
 0x5f0   : > { %v3694_v61 = vshrl.u32 %v3667_v35, 16  ;;  %v3838_v54 = vrot.slane %v3816_v20, %v6267_v37  ;;  %v3821_v1 = vrot.slane %v6994_v19, 1  ;;  %v3822_v25 = vrot.slane %v7009_v49, 1 }
 0x5f1   : > { %v3689_v53 = vrot.slane %v3687_v46, 7  ;;  %v3854_v63 = vrot.slane %v3817_v38, %v6267_v37  ;;  %v3823_v39 = vrot.slane %v7014_v59, 1  ;;  %v3697_v31 = vshll.u32 %v3667_v35, 16 }
 0x5f2   : > { %v3696_v50 = vrot.slane %v3694_v61, 7  ;;  %v3902_v43 = vrot.slane %v3820_v44, %v6267_v37  ;;  %v3918_v26 = vrot.slane %v3821_v1, %v6267_v37  ;;  %v3934_v36 = vrot.slane %v3822_v25, %v6267_v37 }
 0x5f3   : > { %v3692_v55 = vor.u32 %v3690_v52, %v3689_v53  ;;  %v4819_v7 = vcombine.low %v3838_v54, %v3854_v63  ;;  %v3950_v58 = vrot.slane %v3823_v39, %v6267_v37  ;;  %v3753_v4 = vshrl.u32 %v6990_v41, 16 }
 0x5f4   : > { %v3699_v62 = vor.u32 %v3697_v31, %v3696_v50  ;;  %v4823_v56 = vcombine.low %v3902_v43, %v3918_v26  ;;  %v3757_v2 = vrot.slane %v3755_v32, 1  ;;  %v3760_v5 = vshrl.u32 %v7003_v22, 16 }
 0x5f5   : > { %v3738_v17 = vsel %vm6403_vm3, 0, %v3692_v55  ;;  %v4825_v27 = vcombine.low %v3934_v36, %v3950_v58  ;;  %v3762_v6 = vshll.u32 %v7003_v22, 16  ;;  %v4024_v45 = vrot.slane %v4819_v7, %v6267_v37 }
 0x5f6   : > { %v3739_v57 = vsel %vm6403_vm3, 0, %v3699_v62  ;;  %v3746_v10 = vsel %vm6543_vm6, %v3738_v17, 0  ;;  %v3758_v11 = vor.u32 %v3757_v2, %v3753_v4  ;;  %v4059_v16 = vrot.slane %v4823_v56, %v6267_v37 }
 0x5f7   : > { %v3747_v13 = vsel %vm6543_vm6, %v3739_v57, 0  ;;  %v3769_v33 = vshll.u32 %v3746_v10, 16  ;;  %v3818_v14 = vrot.slane %v3746_v10, 1  ;;  %v4073_v12 = vrot.slane %v4825_v27, %v6267_v37 }
 0x5f8   : > { %v3819_v15 = vrot.slane %v3747_v13, 1  ;;  %v3764_v47 = vrot.slane %v3762_v6, 1  ;;  %v3767_v60 = vshrl.u32 %v3746_v10, 16  ;;  %v3774_v23 = vshrl.u32 %v3747_v13, 16 }
 0x5f9   : > { %v3870_v9 = vrot.slane %v3818_v14, %v6267_v37  ;;  %v3771_v8 = vrot.slane %v3769_v33, 1  ;;  %v3776_v30 = vshll.u32 %v3747_v13, 16  ;;  %v4076_v35 = vcombine.low %v4059_v16, %v4073_v12 }
 0x5fa   : > { %v3886_v32 = vrot.slane %v3819_v15, %v6267_v37  ;;  %v3765_v20 = vor.u32 %v3764_v47, %v3760_v5  ;;  %v3824_v48 = vcombine.low %v6990_v41, %v3758_v11  ;;  %v3781_v44 = vshrl.u32 %v6982_v3, 16 }
 0x5fb   : > { %v3772_v46 = vor.u32 %v3771_v8, %v3767_v60  ;;  %v3778_v38 = vrot.slane %v3776_v30, 1  ;;  %v3785_v52 = vrot.slane %v3783_v34, 1  ;;  %v3788_v1 = vshrl.u32 %v6994_v19, 16  ;;  %v5487_v8 = vld [vmem:[%s7211_s29 + $0x8] sm:$0xff]  }
 0x5fc   : > { %v4821_v61 = vcombine.low %v3870_v9, %v3886_v32  ;;  %v3840_v54 = vcombine.low %v7003_v22, %v3765_v20  ;;  %v3790_v53 = vshll.u32 %v6994_v19, 16  ;;  %v3795_v50 = vshrl.u32 %v7009_v49, 16 }
 0x5fd   : > { %v3779_v63 = vor.u32 %v3778_v38, %v3774_v23  ;;  %v3856_v25 = vcombine.low %v3746_v10, %v3772_v46  ;;  %v3786_v39 = vor.u32 %v3785_v52, %v3781_v44  ;;  %v3799_v26 = vrot.slane %v3797_v0, 1 }
 0x5fe   : > { %v4038_v31 = vrot.slane %v4821_v61, %v6267_v37  ;;  %v3847_v41 = vrot.slane %v3840_v54, %v6267_v37  ;;  %v3792_v43 = vrot.slane %v3790_v53, 1  ;;  %v3831_v34 = vrot.slane %v3824_v48, %v6267_v37  ;;  %v4817_v48 = vld [vmem:[#allocation8] ss:$0 sm:$0xff] }
 0x5ff   : > { %v3863_v55 = vrot.slane %v3856_v25, %v6267_v37  ;;  %v3872_v22 = vcombine.low %v3747_v13, %v3779_v63  ;;  %v3804_v7 = vshll.u32 %v7014_v59, 16  ;;  %v3800_v62 = vor.u32 %v3799_v26, %v3795_v50 }
 0x600   : > { %v4041_v36 = vcombine.low %v4024_v45, %v4038_v31  ;;  %v3793_v58 = vor.u32 %v3792_v43, %v3788_v1  ;;  %v3802_v56 = vshrl.u32 %v7014_v59, 16  ;;  %v4818_v2 = vcombine.low %v3831_v34, %v3847_v41 }
 0x601   : > { %v3879_v4 = vrot.slane %v3872_v22, %v6267_v37  ;;  %v3806_v17 = vrot.slane %v3804_v7, 1  ;;  %v3888_v27 = vcombine.low %v6982_v3, %v3786_v39  ;;  %v3920_v5 = vcombine.low %v7009_v49, %v3800_v62 }
 0x602   : > { %5223 = vmatprep.mubr.bf16.mxu1 %v4041_v36  ;;  %v3904_v0 = vcombine.low %v6994_v19, %v3793_v58  ;;  %v4017_v45 = vrot.slane %v4818_v2, %v6267_v37 }
 0x603   : > { %5224 = vmatmul.mubr.bf16.vlgmr.msra.gmra.mrb[36].mxu1 %v4076_v35  ;;  %v4820_v6 = vcombine.low %v3863_v55, %v3879_v4  ;;  %v3807_v57 = vor.u32 %v3806_v17, %v3802_v56  ;;  %v3895_v13 = vrot.slane %v3888_v27, %v6267_v37  ;;  %v3927_v3 = vrot.slane %v3920_v5, %v6267_v37 }
 0x604   : > { %v3911_v10 = vrot.slane %v3904_v0, %v6267_v37 }
 0x605   : > { %v4031_v11 = vrot.slane %v4820_v6, %v6267_v37  ;;  %v3936_v33 = vcombine.low %v7014_v59, %v3807_v57  ;;  %v5486_v59 = vld [vmem:[%s7211_s29] sm:$0xff]  }
 0x606   : > { %v4822_v49 = vcombine.low %v3895_v13, %v3911_v10  ;;  %5227 = vmatprep.subr.bf16.mxu0 %v5486_v59 }
 0x607   : > { %v4039_v14 = vcombine.low %v4017_v45, %v4031_v11  ;;  %v4040_v12 = vcombine.high %v4017_v45, %v4031_v11  ;;  %v3943_v19 = vrot.slane %v3936_v33, %v6267_v37 }
 0x608   : > { %v4052_v16 = vrot.slane %v4822_v49, %v6267_v37  ;;  %v4850_v49 = vld [vmem:[#allocation10] ss:$0 sm:$0xff] }
 0x609   : > { %4259 = vmatprep.mubr.bf16.mxu0 %v4040_v12  ;;  %v4824_v15 = vcombine.low %v3927_v3, %v3943_v19 }
 0x60a   : > { %4260 = vmatmul.mubr.bf16.vlgmr.msra.gmra.mrb[40].mxu0 %v4039_v14 }
 0x60b   : > { %v4066_v47 = vrot.slane %v4824_v15, %v6267_v37  ;;  %5228 = vmatpush3.bf16.msra.mxu0 %v5486_v59 }
 0x60c   : > { %5229 = vmatprep.subr.bf16.mxu0 %v5487_v8 }
 0x60d   : > { %v4075_v60 = vcombine.high %v4052_v16, %v4066_v47  ;;  %v4074_v9 = vcombine.low %v4052_v16, %v4066_v47 }
 0x60f   : > { %4267 = vmatprep.mubr.bf16.mxu0 %v4075_v60  ;;  %5230 = vmatpush3.bf16.msra.mxu0 %v5487_v8 }
 0x612   : > { %4268 = vmatmul.mubr.bf16.gmra.mrb[44].mxu0 %v4074_v9 }
 0x6d6   : > { %v5225_v23 = vpop.f32.mrb[36].mxu1 }
 0x6d7   : > { %v4310_v30 = vpop.f32.mrb[37].mxu1 }
 0x6d8   : > { %v5226_v32 = vpop.f32.mrb[38].mxu1 }
 0x6d9   : > { %v4313_v35 = vpop.f32.mrb[39].mxu1 }
 0x6dd   : > { %v5133_v20 = vpop.f32.mrb[40].mxu0 }
 0x6de   : > { %v5134_v46 = vpop.f32.mrb[41].mxu0 }
 0x6df   : > { %v5135_v38 = vadd.f32 %v5134_v46, %v5133_v20  ;;  %v5136_v44 = vpop.f32.mrb[42].mxu0 }
 0x6e0   : > { %v5137_v52 = vpop.f32.mrb[43].mxu0 }
 0x6e1   : > { %v4262_v61 = vadd.f32 %v5135_v38, %v4817_v48  ;;  %v5138_v54 = vadd.f32 %v5137_v52, %v5136_v44 }
 0x6e3   : > { %v4311_v1 = vadd.f32 %v4310_v30, %v4262_v61  ;;  %v4265_v53 = vadd.f32 %v5138_v54, %v4817_v48 }
 0x6e5   : > { %v4329_v63 = vcombine.high %v4311_v1, %v4311_v1  ;;  %v4314_v25 = vadd.f32 %v4313_v35, %v4265_v53  ;;  %v5139_v39 = vpop.f32.mrb[44].mxu0  ;;  %v4337_v31 = vmax.f32 %v4311_v1, 0.0 }
 0x6e6   : > { %v5140_v50 = vpop.f32.mrb[45].mxu0 }
 0x6e7   : > { %v4338_v41 = vmax.f32 %v4329_v63, 0.0  ;;  %v4330_v43 = vcombine.high %v4314_v25, %v4314_v25  ;;  %v5141_v26 = vadd.f32 %v5140_v50, %v5139_v39  ;;  %v5142_v34 = vpop.f32.mrb[46].mxu0  ;;  %v4339_v55 = vmax.f32 %v4314_v25, 0.0 }
 0x6e8   : > { %v5143_v22 = vpop.f32.mrb[47].mxu0 }
 0x6e9   : > { %v4851_v7 = vpack.c.bf16 %v4338_v41, %v4337_v31  ;;  %v4340_v36 = vmax.f32 %v4330_v43, 0.0  ;;  %v4270_v58 = vadd.f32 %v5141_v26, %v4817_v48  ;;  %v5144_v62 = vadd.f32 %v5143_v22, %v5142_v34 }
 0x6eb   : > { %v4852_v56 = vpack.c.bf16 %v4340_v36, %v4339_v55  ;;  %v4319_v4 = vadd.f32 %v5225_v23, %v4270_v58  ;;  %v4273_v2 = vadd.f32 %v5144_v62, %v4817_v48  ;;  %v4380_v0 = vrot.slane %v4851_v7, %v6267_v37 }
 0x6ed   : > { %v4331_v17 = vcombine.high %v4319_v4, %v4319_v4  ;;  %v4322_v27 = vadd.f32 %v5226_v32, %v4273_v2  ;;  %v4387_v5 = vrot.slane %v4852_v56, %v6267_v37  ;;  %v4341_v6 = vmax.f32 %v4319_v4, 0.0 }
 0x6ef   : > { %v4342_v57 = vmax.f32 %v4331_v17, 0.0  ;;  %v4332_v10 = vcombine.high %v4322_v27, %v4322_v27  ;;  %v4388_v45 = vcombine.low %v4380_v0, %v4387_v5  ;;  %v4343_v13 = vmax.f32 %v4322_v27, 0.0 }
 0x6f1   : > { %v4853_v11 = vpack.c.bf16 %v4342_v57, %v4341_v6  ;;  %v4344_v33 = vmax.f32 %v4332_v10, 0.0  ;;  %5231 = vmatprep.mubr.msk.bf16.mxu0 %vm3580_vm7, %v4388_v45 }
 0x6f3   : > { %v4854_v3 = vpack.c.bf16 %v4344_v33, %v4343_v13  ;;  %v4397_v14 = vrot.slane %v4853_v11, %v6267_v37 }
 0x6f5   : > { %v4404_v12 = vrot.slane %v4854_v3, %v6267_v37 }
 0x6f7   : > { %v4405_v19 = vcombine.low %v4397_v14, %v4404_v12 }
 0x6f9   : > { %5232 = vmatmul.mubr.msk.bf16.vlgmr.msra.gmra.mrb[48].mxu0 %vm3580_vm7, %v4405_v19 }
 0x7cc   : > { %v5233_v15 = vpop.f32.mrb[48].mxu0 }
 0x7cd   : > { %v4467_v16 = vadd.f32 %v5233_v15, %v4850_v49  ;;  %v4458_v47 = vpop.f32.mrb[49].mxu0 }
 0x7ce   : > { %v4459_v60 = vadd.f32 %v4850_v49, %v4458_v47  ;;  %v5234_v9 = vpop.f32.mrb[50].mxu0 }
 0x7cf   : > { %v4479_v59 = vcombine.high %v4467_v16, %v4467_v16  ;;  %v4489_v8 = vadd.f32 %v4467_v16, %v6947_v21  ;;  %v4470_v23 = vadd.f32 %v5234_v9, %v4850_v49  ;;  %v4461_v30 = vpop.f32.mrb[51].mxu0 }
 0x7d0   : > { %v4477_v32 = vcombine.high %v4459_v60, %v4459_v60  ;;  %v4485_v35 = vadd.f32 %v4459_v60, %v6950_v28  ;;  %v4462_v37 = vadd.f32 %v4850_v49, %v4461_v30 }
 0x7d1   : > { %v4490_v20 = vadd.f32 %v4479_v59, %v6953_v51  ;;  %v4497_v48 = vmax.f32 %v4489_v8, 0.0  ;;  %v4480_v46 = vcombine.high %v4470_v23, %v4470_v23  ;;  %v4491_v38 = vadd.f32 %v4470_v23, %v6957_v40 }
 0x7d2   : > { %v4486_v44 = vadd.f32 %v4477_v32, %v6960_v18  ;;  %v4493_v52 = vmax.f32 %v4485_v35, 0.0  ;;  %v4478_v61 = vcombine.high %v4462_v37, %v4462_v37  ;;  %v4487_v21 = vadd.f32 %v4462_v37, %v6964_v29 }
 0x7d3   : > { %v4498_v54 = vmax.f32 %v4490_v20, 0.0  ;;  %4505 = vst [vmem:[%s620_s26 + $0x10] sm:$0xf] %v4497_v48  ;;  %v4492_v28 = vadd.f32 %v4480_v46, %v6968_v42  ;;  %v4499_v1 = vmax.f32 %v4491_v38, 0.0 }
 0x7d4   : > { %v4494_v51 = vmax.f32 %v4486_v44, 0.0  ;;  %4501 = vst [vmem:[%s620_s26] sm:$0xf] %v4493_v52  ;;  %v4488_v40 = vadd.f32 %v4478_v61, %v6973_v24  ;;  %v4495_v18 = vmax.f32 %v4487_v21, 0.0 }
 0x7d5   : > { %4506 = vst [vmem:[%s620_s26 + $0x14] sm:$0xf] %v4498_v54  ;;  %v4500_v53 = vmax.f32 %v4492_v28, 0.0  ;;  %4507 = vst [vmem:[%s620_s26 + $0x18] sm:$0xf] %v4499_v1 }
 0x7d6   : > { %4502 = vst [vmem:[%s620_s26 + $0x4] sm:$0xf] %v4494_v51  ;;  %v4496_v29 = vmax.f32 %v4488_v40, 0.0  ;;  %4503 = vst [vmem:[%s620_s26 + $0x8] sm:$0xf] %v4495_v18 }
 0x7d7   : > { %4508 = vst [vmem:[%s620_s26 + $0x1c] sm:$0xf] %v4500_v53 }
 0x7d8   : > { %4504 = vst [vmem:[%s620_s26 + $0xc] sm:$0xf] %v4496_v29 }
 0x7d9   : > { %5645 = shalt.err (!%p5642_p3)
}
 0x7da   : > { %s5646_s28 = scalar_lea.hbm %s7097_s15, 512  ;;  %s5650_s26 = scalar_lea.hbm %s7212_s19, 1024 }
 0x7db   : > { %p5647_p9 = scmp.ne.s32.totalorder %s7097_s15, %s5646_s28  ;;  %p5651_p7 = scmp.lt.u32.totalorder %s7097_s15, %s7212_s19 }
 0x7dc   : > { %p5652_p12 = scmp.lt.u32.totalorder %s5650_s26, %s5646_s28  ;;  %p5654_p1 = scmp.lt.u32.totalorder %s5646_s28, %s7097_s15 }
 0x7dd   : > { %p5648_p13 = pnand %p5647_p9, %p5956_p5 }
 0x7de   : > { %p5653_p2 = por %p5652_p12, %p5651_p7 }
 0x7df   : > { %p5649_p11 = pneg %p5648_p13 }
 0x7e0   : > { %p5655_p4 = por %p5654_p1, %p5653_p2 }
 0x7e2   : > { %p5656_p0 = pnand %p5655_p4, %p5649_p11 }
 0x7e4   : > { %5659 = shalt.err (!%p5656_p0)
}
 0x7e5   : > { %s5723_s20 = smov 64   ;;  %s5724_s17 = smov 4  }
 0x7e6   : > { %5251 = dma.vmem_to_hbm [thread:$0]  (%p5956_p5), %s7091_s7, 512, %s7097_s15, %s4510_s0, %s5723_s20, %s5723_s20, %s5724_s17  }
 0x7e7 PF: > { %s7213_s30 = sld [smem:[#allocation17_spill]]  ;;  %s7214_s27 = sld [smem:[#allocation18_spill]] }
 0x7e8   : > { %p7216_p6 = scmp.ge.s32.totalorder %s5710_s24, 2 }
 0x7ed   : > { %s4538_s9 = sand.u32 1, %s7213_s30   ;;  %p7215_p8 = scmp.ne.s32.totalorder %s7214_s27, 0 }
 0x7ee   : > { %s4539_s28 = scalar_lea.sflag [#allocation4], %s4538_s9 }
 0x7ef   : > { %p5271_p10 = pnand %p7216_p6, %p7215_p8 }
 0x7f1   : > { %5693 = dma.done.wait (!%p5271_p10), %s4539_s28, 512  }
 0x7f2   : > { %5695 = vsyncadd (!%p5271_p10), %s4539_s28, 4294966784  ;;  %p33_p3 = scmp.ge.s32.totalorder %s5942_s11, 4   ;;  %s7217_s21 = smov %s5702_s22 }
 0x7f3   : > { %s7218_s22 = smov %s5706_s23  ;;  %s7219_s23 = smov %s5952_s10 }
 0x7f4   : > { %s7220_s24 = smov %s5942_s11  ;;  %35 = sbr.rel (!%p33_p3) target bundleno = 20 (0x14), region = 154 }
 0x7fb   :  { %4544 = vsyncpa [#allocation3], 1 }
 0x7fc   :  { %4546 = vsyncpa [#allocation3 + $0x1], 1 }
 0x7fd   :  { %4547 = vsyncpa [#allocation6], 1 }
 0x7fe   :  { %4549 = vsyncpa [#allocation6 + $0x1], 1 }
 0x7ff   :  { %4550 = vsyncpa [#allocation9], 1 }
 0x800   :  { %4551 = vsyncpa [#allocation4], 1 }
 0x801   :  { %4553 = vsyncpa [#allocation4 + $0x1], 1 }

</bundles_post_ra>
